<compile_context>
chip_gen: v7x
topology: tpu7x:2x2x1
jax: 0.10.0
libtpu: 0.0.40
codegen_flags: <defaults>
</compile_context>

<pallas_src>
import jax
import jax.numpy as jnp
from jax.experimental import pallas as pl
from jax.experimental.pallas import tpu as pltpu

_IGNORE_INDEX = -100
_NEG_BIG = -1e30  # bias for padded class lanes


def _round_up(x, m):
    return (x + m - 1) // m * m


def _choose_tile_n(n, tile_n):
    """Token-tile size: a multiple of 256 (full MXU rows / unmasked layouts),
    capped so tiny problems don't over-pad, and preferring >= 2 grid steps so
    the single 'parallel' axis can be split across v7x's two TensorCores."""
    cand = _round_up(n, 256)                       # smallest useful tile
    t = min(_round_up(tile_n, 256), cand)
    if t >= cand and cand > 256:
        # Would collapse the grid to one step; halve for megacore headroom.
        t = min(t, _round_up(pl.cdiv(n, 2), 256))
    return t


# --------------------------------------------------------------------------
# Kernels
# --------------------------------------------------------------------------

def _linear_ce_loss_kernel(labels_ref, x_ref, w_ref, b_ref, lsum_ref, cnt_ref):
    """One token tile: Linear (bf16 MXU, f32 accumulation) + masked stable
    cross-entropy, reduced in-kernel to per-tile (loss_sum, valid_count)
    partials.  No per-token / last-dim-1 output streams."""
    logits = jnp.dot(x_ref[...], w_ref[...],
                     preferred_element_type=jnp.float32) + b_ref[...]
    tn, c_pad = logits.shape

    labels = labels_ref[...]                           # (tn, 1) int32
    valid = labels != _IGNORE_INDEX                    # (tn, 1) bool
    safe_labels = jnp.where(valid, labels, 0)
    col = jax.lax.broadcasted_iota(jnp.int32, (tn, c_pad), 1)

    # Padded class columns carry a -1e30 bias: never win the max, exp() -> 0.
    m = jnp.max(logits, axis=-1, keepdims=True)        # (tn, 1)
    z = logits - m
    lse = jnp.log(jnp.sum(jnp.exp(z), axis=-1, keepdims=True))
    z_label = jnp.sum(jnp.where(col == safe_labels, z, 0.0),
                      axis=-1, keepdims=True)
    per_token = jnp.where(valid, lse - z_label, 0.0)    # (tn, 1)

    # Dense (1, 8, 128) partial blocks -> single unmasked vreg stores.
    lsum_ref[...] = jnp.full(lsum_ref.shape, jnp.sum(per_token), jnp.float32)
    cnt_ref[...] = jnp.full(cnt_ref.shape,
                            jnp.sum(valid.astype(jnp.float32)), jnp.float32)


def _linear_argmax_kernel(x_ref, w_ref, b_ref, preds_ref):
    """Eval path: Linear + argmax (first class index attaining the row max)."""
    logits = jnp.dot(x_ref[...], w_ref[...],
                     preferred_element_type=jnp.float32) + b_ref[...]
    tn, c_pad = logits.shape
    col = jax.lax.broadcasted_iota(jnp.int32, (tn, c_pad), 1)
    m = jnp.max(logits, axis=-1, keepdims=True)
    preds_ref[...] = jnp.min(jnp.where(logits == m, col, c_pad),
                             axis=-1, keepdims=True).astype(jnp.int32)


# --------------------------------------------------------------------------
# Wrappers
# --------------------------------------------------------------------------

def _prep_operands(features, weight, bias, tile_n, compute_dtype):
    B, S, H = features.shape
    C = weight.shape[0]
    N = B * S

    c_pad = _round_up(C, 128)
    tn = _choose_tile_n(N, tile_n)
    n_pad = _round_up(N, tn)

    x = features.reshape(N, H)
    if x.dtype != compute_dtype:
        # Backbone should already emit compute_dtype; this is a fallback only.
        x = x.astype(compute_dtype)
    if n_pad != N:
        # Small ragged-tail pad only.  TODO(synk): for very large ragged N this
        # copy could be avoided with in-kernel row masking on a cdiv grid.
        x = jnp.pad(x, ((0, n_pad - N), (0, 0)))

    w = jnp.transpose(weight).astype(compute_dtype)     # (H, C) torch->matmul
    b = bias.astype(jnp.float32).reshape(1, C)
    if c_pad != C:
        w = jnp.pad(w, ((0, 0), (0, c_pad - C)))
        b = jnp.pad(b, ((0, 0), (0, c_pad - C)), constant_values=_NEG_BIG)

    return x, w, b, (B, S, H, C, N, n_pad, c_pad, tn)


def bert_softmax_loss(features, weight, bias, seq_labels, *,
                      tile_n=1024, compute_dtype=jnp.bfloat16):
    """Training path: scalar masked cross-entropy (ignore_index=-100)."""
    x, w, b, (B, S, H, C, N, n_pad, c_pad, tn) = _prep_operands(
        features, weight, bias, tile_n, compute_dtype)

    labels = seq_labels.reshape(N, 1).astype(jnp.int32)
    if n_pad != N:
        labels = jnp.pad(labels, ((0, n_pad - N), (0, 0)),
                         constant_values=_IGNORE_INDEX)

    n_tiles = n_pad // tn
    lsum_p, cnt_p = pl.pallas_call(
        _linear_ce_loss_kernel,
        out_shape=(jax.ShapeDtypeStruct((n_tiles, 8, 128), jnp.float32),
                   jax.ShapeDtypeStruct((n_tiles, 8, 128), jnp.float32)),
        grid_spec=pltpu.PrefetchScalarGridSpec(
            num_scalar_prefetch=0,
            grid=(n_tiles,),
            in_specs=[pl.BlockSpec((tn, 1), lambda i: (i, 0)),      # labels
                      pl.BlockSpec((tn, H), lambda i: (i, 0)),      # x (bf16)
                      pl.BlockSpec((H, c_pad), lambda i: (0, 0)),   # W resident
                      pl.BlockSpec((1, c_pad), lambda i: (0, 0))],  # b resident
            out_specs=(pl.BlockSpec((1, 8, 128), lambda i: (i, 0, 0)),
                       pl.BlockSpec((1, 8, 128), lambda i: (i, 0, 0)))),
        compiler_params=pltpu.CompilerParams(
            # No cross-step state -> token axis is parallel (v7x megacore).
            dimension_semantics=("parallel",)),
    )(labels, x, w, b)

    loss_sum = jnp.sum(lsum_p[:, 0, 0])
    count = jnp.sum(cnt_p[:, 0, 0])
    # NOTE: PyTorch F.cross_entropy returns NaN when every label is ignored;
    # we return 0.0 instead (guarded divide).
    return loss_sum / jnp.maximum(count, 1.0)


def bert_softmax_predict(features, weight, bias, *,
                         tile_n=1024, compute_dtype=jnp.bfloat16):
    """Eval path: per-token argmax over classes, shape (B, S)."""
    x, w, b, (B, S, H, C, N, n_pad, c_pad, tn) = _prep_operands(
        features, weight, bias, tile_n, compute_dtype)

    n_tiles = n_pad // tn
    preds_p = pl.pallas_call(
        _linear_argmax_kernel,
        out_shape=jax.ShapeDtypeStruct((n_pad, 1), jnp.int32),
        grid_spec=pltpu.PrefetchScalarGridSpec(
            num_scalar_prefetch=0,
            grid=(n_tiles,),
            in_specs=[pl.BlockSpec((tn, H), lambda i: (i, 0)),      # x (bf16)
                      pl.BlockSpec((H, c_pad), lambda i: (0, 0)),   # W resident
                      pl.BlockSpec((1, c_pad), lambda i: (0, 0))],  # b resident
            out_specs=pl.BlockSpec((tn, 1), lambda i: (i, 0))),
        compiler_params=pltpu.CompilerParams(
            dimension_semantics=("parallel",)),
    )(x, w, b)
    return preds_p[:N, 0].reshape(B, S)


def synthetic_backbone(input_ids, attention_mask, emb_table):
    # TODO(synk): pretrained HF BERT backbone has no clean Pallas equivalent;
    # replaced by a deterministic bf16 embedding lookup gated by the mask.
    feats = emb_table[input_ids]                                  # (B, S, H) bf16
    return feats * attention_mask[..., None].astype(feats.dtype)


def bert_softmax_forward(input_ids, attention_mask, seq_labels, emb_table,
                         weight, bias, *, training=True):
    """Mirrors BertSoftmax.forward: loss in training, argmax preds in eval."""
    features = synthetic_backbone(input_ids, attention_mask, emb_table)
    if not training:
        return bert_softmax_predict(features, weight, bias)
    return bert_softmax_loss(features, weight, bias, seq_labels)


# --------------------------------------------------------------------------
# Demo / correctness check
# --------------------------------------------------------------------------

if __name__ == "__main__":
    B, S, H, C, VOCAB = 2, 8, 32, 8, 100

    key = jax.random.PRNGKey(0)
    k_emb, k_ids, k_w, k_b, k_lab = jax.random.split(key, 5)

    # Backbone emits bf16 directly -> no wrapper-side astype pass over x.
    emb_table = (jax.random.normal(k_emb, (VOCAB, H), dtype=jnp.float32)
                 * 0.1).astype(jnp.bfloat16)
    input_ids = jax.random.randint(k_ids, (B, S), 0, VOCAB, dtype=jnp.int32)

    # attention mask: first sequence full, second sequence length 5
    attention_mask = jnp.array(
        [[1] * S, [1] * 5 + [0] * (S - 5)], dtype=jnp.int32)

    # Linear parameters (torch Linear layout: (out_features, in_features))
    weight = jax.random.normal(k_w, (C, H), dtype=jnp.float32) * 0.05
    bias = jax.random.normal(k_b, (C,), dtype=jnp.float32) * 0.01

    # Labels; positions with attention_mask == 0 are ignored (-100)
    seq_labels = jax.random.randint(k_lab, (B, S), 0, C, dtype=jnp.int32)
    seq_labels = jnp.where(attention_mask == 1, seq_labels, -100)

    features = synthetic_backbone(input_ids, attention_mask, emb_table)

    # Training path (module returns the scalar masked CE loss).
    loss = bert_softmax_loss(features, weight, bias, seq_labels)
    # Eval path (module returns logits.argmax(dim=-1)).
    preds = bert_softmax_predict(features, weight, bias)
    loss, preds = jax.block_until_ready((loss, preds))

    # Pure-JAX reference with the same bf16-in / f32-accumulate math
    # (F.cross_entropy with ignore_index=-100 semantics).
    xb = features.reshape(-1, H).astype(jnp.bfloat16)
    wb = jnp.transpose(weight).astype(jnp.bfloat16)
    logits_ref = jnp.dot(xb, wb, preferred_element_type=jnp.float32) \
        + bias.astype(jnp.float32)
    labels_flat = seq_labels.reshape(-1)
    valid = labels_flat != -100
    lse = jax.nn.logsumexp(logits_ref, axis=-1)
    correct = jnp.take_along_axis(
        logits_ref, jnp.where(valid, labels_flat, 0)[:, None], axis=-1)[:, 0]
    loss_ref = jnp.sum(jnp.where(valid, lse - correct, 0.0)) / jnp.sum(valid)
    preds_ref = jnp.argmax(logits_ref, axis=-1).reshape(B, S)

    assert preds.shape == (B, S)
    assert jnp.allclose(loss, loss_ref, atol=1e-4), (loss, loss_ref)
    assert jnp.array_equal(preds, preds_ref), "preds mismatch"

    print("KERNEL_OK")
</pallas_src>

<mosaic_0001>
module attributes {stable_mosaic.version = 11 : i64} {
  func.func @_linear_ce_loss_kernel(%arg0: i32, %arg1: memref<256x1xi32, #tpu.memory_space<vmem>>, %arg2: memref<256x32xbf16, #tpu.memory_space<vmem>>, %arg3: memref<32x128xbf16, #tpu.memory_space<vmem>>, %arg4: memref<1x128xf32, #tpu.memory_space<vmem>>, %arg5: memref<1x8x128xf32, #tpu.memory_space<vmem>>, %arg6: memref<1x8x128xf32, #tpu.memory_space<vmem>>) attributes {dimension_semantics = [#tpu.dimension_semantics<parallel>], iteration_bounds = array<i64: 1>, scalar_prefetch = 0 : i64, scratch_operands = 0 : i64, tpu.core_type = #tpu.core_type<tc>, window_params = [{transform_indices = @transform_0, window_bounds = array<i64: 256, 1>}, {transform_indices = @transform_1, window_bounds = array<i64: 256, 32>}, {pipeline_mode = #tpu.pipeline_mode<synchronous>, transform_indices = @transform_2, window_bounds = array<i64: 32, 128>}, {pipeline_mode = #tpu.pipeline_mode<synchronous>, transform_indices = @transform_3, window_bounds = array<i64: 1, 128>}, {transform_indices = @transform_4, window_bounds = array<i64: 1, 8, 128>}, {transform_indices = @transform_5, window_bounds = array<i64: 1, 8, 128>}]} {
    %c0 = arith.constant 0 : index
    %c0_0 = arith.constant 0 : index
    %0 = vector.load %arg2[%c0, %c0_0] : memref<256x32xbf16, #tpu.memory_space<vmem>>, vector<256x32xbf16>
    %c0_1 = arith.constant 0 : index
    %c0_2 = arith.constant 0 : index
    %1 = vector.load %arg3[%c0_1, %c0_2] : memref<32x128xbf16, #tpu.memory_space<vmem>>, vector<32x128xbf16>
    %cst = arith.constant dense<0.000000e+00> : vector<256x128xf32>
    %2 = tpu.matmul %0, %1, %cst {dimension_numbers = #tpu.dot_dimension_numbers<[1], [0], [0], [1], [0, 0, 1, 1], [], []>} : vector<256x32xbf16>, vector<32x128xbf16>, vector<256x128xf32> -> vector<256x128xf32>
    %c0_3 = arith.constant 0 : index
    %c0_4 = arith.constant 0 : index
    %3 = vector.load %arg4[%c0_3, %c0_4] : memref<1x128xf32, #tpu.memory_space<vmem>>, vector<1x128xf32>
    %4 = vector.broadcast %3 : vector<1x128xf32> to vector<256x128xf32>
    %5 = arith.addf %2, %4 : vector<256x128xf32>
    %c0_5 = arith.constant 0 : index
    %c0_6 = arith.constant 0 : index
    %6 = vector.load %arg1[%c0_5, %c0_6] : memref<256x1xi32, #tpu.memory_space<vmem>>, vector<256x1xi32>
    %c-100_i32 = arith.constant -100 : i32
    %7 = vector.broadcast %c-100_i32 : i32 to vector<256x1xi32>
    %8 = arith.cmpi ne, %6, %7 : vector<256x1xi32>
    %c0_i32 = arith.constant 0 : i32
    %9 = vector.broadcast %c0_i32 : i32 to vector<256x1xi32>
    %10 = arith.select %8, %6, %9 : vector<256x1xi1>, vector<256x1xi32>
    %11 = tpu.iota {dimensions = array<i32: 1>} : vector<256x128xi32>
    %cst_7 = arith.constant dense<0xFF800000> : vector<256xf32>
    %12 = vector.multi_reduction <maximumf>, %5, %cst_7 [1] : vector<256x128xf32> to vector<256xf32>
    %13 = vector.shape_cast %12 : vector<256xf32> to vector<256x1xf32>
    %14 = vector.broadcast %13 : vector<256x1xf32> to vector<256x128xf32>
    %15 = arith.subf %5, %14 : vector<256x128xf32>
    %16 = math.exp %15 : vector<256x128xf32>
    %cst_8 = arith.constant dense<0.000000e+00> : vector<256xf32>
    %17 = vector.multi_reduction <add>, %16, %cst_8 [1] : vector<256x128xf32> to vector<256xf32>
    %18 = vector.shape_cast %17 : vector<256xf32> to vector<256x1xf32>
    %19 = math.log %18 : vector<256x1xf32>
    %20 = vector.broadcast %10 : vector<256x1xi32> to vector<256x128xi32>
    %21 = arith.cmpi eq, %11, %20 : vector<256x128xi32>
    %cst_9 = arith.constant 0.000000e+00 : f32
    %22 = vector.broadcast %cst_9 : f32 to vector<256x128xf32>
    %23 = arith.select %21, %15, %22 : vector<256x128xi1>, vector<256x128xf32>
    %cst_10 = arith.constant dense<0.000000e+00> : vector<256xf32>
    %24 = vector.multi_reduction <add>, %23, %cst_10 [1] : vector<256x128xf32> to vector<256xf32>
    %25 = vector.shape_cast %24 : vector<256xf32> to vector<256x1xf32>
    %26 = arith.subf %19, %25 : vector<256x1xf32>
    %cst_11 = arith.constant 0.000000e+00 : f32
    %27 = vector.broadcast %cst_11 : f32 to vector<256x1xf32>
    %28 = arith.select %8, %26, %27 : vector<256x1xi1>, vector<256x1xf32>
    %29 = vector.shape_cast %28 : vector<256x1xf32> to vector<1x256x1xf32>
    %cst_12 = arith.constant dense<0.000000e+00> : vector<1xf32>
    %30 = vector.multi_reduction <add>, %29, %cst_12 [1, 2] : vector<1x256x1xf32> to vector<1xf32>
    %31 = vector.shape_cast %30 : vector<1xf32> to vector<1x1x1xf32>
    %32 = vector.extract %31[0, 0, 0] : f32 from vector<1x1x1xf32>
    %33 = vector.broadcast %32 : f32 to vector<1x8x128xf32>
    %c0_13 = arith.constant 0 : index
    %c0_14 = arith.constant 0 : index
    %c0_15 = arith.constant 0 : index
    %34 = vector.load %arg5[%c0_13, %c0_14, %c0_15] : memref<1x8x128xf32, #tpu.memory_space<vmem>>, vector<1x8x128xf32>
    tpu.vector_store %arg5[%c0_13, %c0_14, %c0_15], %33 {strides = array<i32>} : memref<1x8x128xf32, #tpu.memory_space<vmem>>, vector<1x8x128xf32>,
    %35 = arith.extui %8 : vector<256x1xi1> to vector<256x1xi32>
    %36 = arith.sitofp %35 : vector<256x1xi32> to vector<256x1xf32>
    %37 = vector.shape_cast %36 : vector<256x1xf32> to vector<1x256x1xf32>
    %cst_16 = arith.constant dense<0.000000e+00> : vector<1xf32>
    %38 = vector.multi_reduction <add>, %37, %cst_16 [1, 2] : vector<1x256x1xf32> to vector<1xf32>
    %39 = vector.shape_cast %38 : vector<1xf32> to vector<1x1x1xf32>
    %40 = vector.extract %39[0, 0, 0] : f32 from vector<1x1x1xf32>
    %41 = vector.broadcast %40 : f32 to vector<1x8x128xf32>
    %c0_17 = arith.constant 0 : index
    %c0_18 = arith.constant 0 : index
    %c0_19 = arith.constant 0 : index
    %42 = vector.load %arg6[%c0_17, %c0_18, %c0_19] : memref<1x8x128xf32, #tpu.memory_space<vmem>>, vector<1x8x128xf32>
    tpu.vector_store %arg6[%c0_17, %c0_18, %c0_19], %41 {strides = array<i32>} : memref<1x8x128xf32, #tpu.memory_space<vmem>>, vector<1x8x128xf32>,
    return
  }
  func.func @transform_0(%arg0: i32) -> (i32, i32) {
    %c0_i32 = arith.constant 0 : i32
    %c0_i32_0 = arith.constant 0 : i32
    return %arg0, %c0_i32 : i32, i32
  }
  func.func @transform_1(%arg0: i32) -> (i32, i32) {
    %c0_i32 = arith.constant 0 : i32
    %c0_i32_0 = arith.constant 0 : i32
    return %arg0, %c0_i32 : i32, i32
  }
  func.func @transform_2(%arg0: i32) -> (i32, i32) {
    %c0_i32 = arith.constant 0 : i32
    %c0_i32_0 = arith.constant 0 : i32
    %c0_i32_1 = arith.constant 0 : i32
    return %c0_i32, %c0_i32_0 : i32, i32
  }
  func.func @transform_3(%arg0: i32) -> (i32, i32) {
    %c0_i32 = arith.constant 0 : i32
    %c0_i32_0 = arith.constant 0 : i32
    %c0_i32_1 = arith.constant 0 : i32
    return %c0_i32, %c0_i32_0 : i32, i32
  }
  func.func @transform_4(%arg0: i32) -> (i32, i32, i32) {
    %c0_i32 = arith.constant 0 : i32
    %c0_i32_0 = arith.constant 0 : i32
    %c0_i32_1 = arith.constant 0 : i32
    return %arg0, %c0_i32, %c0_i32_0 : i32, i32, i32
  }
  func.func @transform_5(%arg0: i32) -> (i32, i32, i32) {
    %c0_i32 = arith.constant 0 : i32
    %c0_i32_0 = arith.constant 0 : i32
    %c0_i32_1 = arith.constant 0 : i32
    return %arg0, %c0_i32, %c0_i32_0 : i32, i32, i32
  }
}

</mosaic_0001>

<bundles_post_ra>
// kernel: tpu_custom_call.1
= control target key start
LH: loop header
LB: loop body
LE: loop exit
PB: predicated region body
PF: predicated region fallthrough
CT: control target
= control target key end

     0   :  { %11 = vsyncpa [#allocation3], 0  ;;  %vm157_vm0 = vcmask 261120   ;;  %v1611_v6 = vmov 0   ;;  %s2671_s0 = inlined_call_operand.vmem [shape: s32[256,1], index: 0, kind: input, shape index: {}]   ;;  %s2672_s1 = inlined_call_operand.vmem [shape: bf16[256,32], index: 1, kind: input, shape index: {}]   ;;  %s2673_s2 = inlined_call_operand.vmem [shape: bf16[32,128], index: 2, kind: input, shape index: {}]   ;;  %s2674_s3 = inlined_call_operand.vmem [shape: f32[1,128], index: 3, kind: input, shape index: {}]   ;;  %s2675_s4 = inlined_call_operand.hbm [shape: f32[1,8,128], index: 4, kind: output, shape index: {0}]   ;;  %s2676_s5 = inlined_call_operand.hbm [shape: f32[1,8,128], index: 5, kind: output, shape index: {1}]  }
   0x1   :  { %v1417_v0 = vld [vmem:[%s2673_s2] sm:$0xff]   ;;  %v1418_v1 = vld [vmem:[%s2673_s2 + $0x8] sm:$0xff]   ;;  %1416 = vset.pattern.permute.xlu1 %v1611_v6  ;;  %v1423_v7 = vld [vmem:[%s2672_s1 + $0x50] sm:$0xff]   ;;  %1415 = vset.pattern.permute.xlu0 %v1611_v6 }
   0x2   :  { %1367 = vmatprep.subr.bf16.mxu0 %v1417_v0  ;;  %1403 = vmatprep.subr.bf16.mxu1 %v1417_v0  ;;  %v1419_v2 = vld [vmem:[%s2672_s1] sm:$0xff]   ;;  %v1420_v3 = vld [vmem:[%s2672_s1 + $0x8] sm:$0xff]   ;;  %v1424_v8 = vld [vmem:[%s2672_s1 + $0x10] sm:$0xff]  }
   0x3   :  { %1368 = vmatpush3.bf16.msra.mxu0 %v1417_v0  ;;  %1405 = vmatpush3.bf16.msra.mxu1 %v1417_v0  ;;  %v1421_v4 = vld [vmem:[%s2672_s1 + $0x40] sm:$0xff]   ;;  %v1422_v5 = vld [vmem:[%s2672_s1 + $0x48] sm:$0xff]   ;;  %v1425_v9 = vld [vmem:[%s2672_s1 + $0x58] sm:$0xff]  }
   0x4   :  { %1369 = vmatprep.subr.bf16.mxu0 %v1418_v1  ;;  %1404 = vmatprep.subr.bf16.mxu1 %v1418_v1  ;;  %v1426_v10 = vld [vmem:[%s2672_s1 + $0x18] sm:$0xff]   ;;  %v1427_v11 = vld [vmem:[%s2672_s1 + $0x60] sm:$0xff]   ;;  %v1692_v13 = vld [vmem:[%s2671_s0 + $0x8] sm:$0xff] }
   0x5   :  { %1371 = vmatprep.mubr.msk.bf16.mxu0 %vm157_vm0, %v1419_v2  ;;  %1387 = vmatprep.mubr.msk.bf16.mxu1 %vm157_vm0, %v1421_v4  ;;  %v1429_v12 = vld [vmem:[%s2672_s1 + $0x20] sm:$0xff]   ;;  %2749 = vst [vmem:[#allocation8_spill] sm:$0xff] %v1692_v13  ;;  %v1697_v14 = vld [vmem:[%s2671_s0 + $0x18] sm:$0xff]  ;;  %vm400_vm1 = vcmp.ne.s32.totalorder %v1692_v13, 4294967196  ;;  %v1711_v16 = vld [vmem:[%s2671_s0 + $0x10] sm:$0xff] }
   0x6   :  { %vm402_vm2 = vcmp.ne.s32.totalorder %v1697_v14, 4294967196  ;;  %v1706_v15 = vld [vmem:[%s2671_s0] sm:$0xff]  ;;  %v432_v17 = vsel %vm400_vm1, %v1692_v13, 0  ;;  %v1719_v18 = vld [vmem:[%s2671_s0 + $0x28] sm:$0xff] }
   0x7   :  { %1370 = vmatpush3.bf16.msra.mxu0 %v1418_v1  ;;  %1406 = vmatpush3.bf16.msra.mxu1 %v1418_v1  ;;  %2750 = vst [vmem:[#allocation9_spill] sm:$0xff] %v1706_v15 }
   0xa   :  { %1372 = vmatmul.mubr.msk.bf16.vlgmr.msra.gmra.mrb[0].mxu0 %vm157_vm0, %v1420_v3  ;;  %1388 = vmatmul.mubr.msk.bf16.vlgmr.msra.gmra.mrb[0].mxu1 %vm157_vm0, %v1422_v5 }
   0xb   :  { %1391 = vmatprep.mubr.msk.bf16.mxu1 %vm157_vm0, %v1423_v7  ;;  %1375 = vmatprep.mubr.msk.bf16.mxu0 %vm157_vm0, %v1424_v8 }
  0x12   :  { %1392 = vmatmul.mubr.msk.bf16.gmra.mrb[4].mxu1 %vm157_vm0, %v1425_v9  ;;  %1376 = vmatmul.mubr.msk.bf16.gmra.mrb[4].mxu0 %vm157_vm0, %v1426_v10 }
  0x13   :  { %1395 = vmatprep.mubr.msk.bf16.mxu1 %vm157_vm0, %v1427_v11  ;;  %1379 = vmatprep.mubr.msk.bf16.mxu0 %vm157_vm0, %v1429_v12 }
  0x14   :  { %12 = vsyncpa [#allocation5], 0  ;;  %757 = vperm.xlu1 %1416, %v432_v17   ;;  %v1428_v19 = vld [vmem:[%s2672_s1 + $0x68] sm:$0xff]   ;;  %v434_v21 = vsel %vm402_vm2, %v1697_v14, 0  ;;  %vm399_vm3 = vcmp.ne.s32.totalorder %v1706_v15, 4294967196  ;;  %vm401_vm4 = vcmp.ne.s32.totalorder %v1711_v16, 4294967196 }
  0x15   :  { %v1430_v20 = vld [vmem:[%s2672_s1 + $0x28] sm:$0xff]   ;;  %v1431_v22 = vld [vmem:[%s2672_s1 + $0x30] sm:$0xff]   ;;  %vm404_vm5 = vcmp.ne.s32.totalorder %v1719_v18, 4294967196  ;;  %v431_v24 = vsel %vm399_vm3, %v1706_v15, 0  ;;  %v1745_v25 = vld [vmem:[%s2671_s0 + $0x20] sm:$0xff]  ;;  %v433_v26 = vsel %vm401_vm4, %v1711_v16, 0 }
  0x16   :  { %v1433_v23 = vld [vmem:[%s2672_s1 + $0x70] sm:$0xff]   ;;  %754 = vperm.xlu0 %1415, %v431_v24   ;;  %v436_v27 = vsel %vm404_vm5, %v1719_v18, 0  ;;  %vm2745_vm6 = vcmp.ne.s32.totalorder %v1745_v25, 4294967196  ;;  %v1432_v29 = vld [vmem:[%s2672_s1 + $0x38] sm:$0xff]   ;;  %v1772_v31 = vld [vmem:[%s2674_s3] ss:$0 sm:$0xff] }
  0x17   :  { %v435_v28 = vsel %vm2745_vm6, %v1745_v25, 0  ;;  %v1434_v30 = vld [vmem:[%s2672_s1 + $0x78] sm:$0xff]   ;;  %v2780_v15 = vmov 0.0   ;;  %s1614_s13 = smov [#allocation4]  }
  0x18   :  { %763 = vperm.xlu1 %1416, %v434_v21   ;;  %s1270_s14 = sshll.u32 %s1614_s13, 4  ;;  %s2640_s14 = int_to_ptr.vmem [resolvable:$true] %s1270_s14 }
  0x1a   :  { %1396 = vmatmul.mubr.msk.bf16.gmra.mrb[8].mxu1 %vm157_vm0, %v1428_v19  ;;  %1380 = vmatmul.mubr.msk.bf16.gmra.mrb[8].mxu0 %vm157_vm0, %v1430_v20 }
  0x1b   :  { %1383 = vmatprep.mubr.msk.bf16.mxu0 %vm157_vm0, %v1431_v22  ;;  %1399 = vmatprep.mubr.msk.bf16.mxu1 %vm157_vm0, %v1433_v23 }
  0x1c   :  { %760 = vperm.xlu0 %1415, %v433_v26   ;;  %769 = vperm.xlu1 %1416, %v436_v27  }
  0x20   :  { %766 = vperm.xlu0 %1415, %v435_v28  }
  0x22   :  { %1384 = vmatmul.mubr.msk.bf16.gmra.mrb[12].mxu0 %vm157_vm0, %v1432_v29  ;;  %1400 = vmatmul.mubr.msk.bf16.gmra.mrb[12].mxu1 %vm157_vm0, %v1434_v30 }
  0xdd   :  { %v1373_v32 = vpop.f32.mrb[0].mxu0  ;;  %v1389_v33 = vpop.f32.mrb[0].mxu1 }
  0xde   :  { %v1775_v34 = vadd.f32 %v1373_v32, %v1772_v31  ;;  %v240_v35 = vpop.f32.mrb[1].mxu0  ;;  %v304_v36 = vpop.f32.mrb[1].mxu1  ;;  %v1781_v40 = vadd.f32 %v1389_v33, %v1772_v31 }
  0xdf   :  { %v1778_v37 = vadd.f32 %v1772_v31, %v240_v35  ;;  %v1374_v38 = vpop.f32.mrb[2].mxu0  ;;  %v1390_v39 = vpop.f32.mrb[2].mxu1  ;;  %v1785_v43 = vadd.f32 %v1772_v31, %v304_v36 }
  0xe0   :  { %469 = vmax.xlane.f32.xlu1 %v1775_v34  ;;  %v243_v41 = vpop.f32.mrb[3].mxu0  ;;  %v307_v42 = vpop.f32.mrb[3].mxu1  ;;  %v1791_v46 = vadd.f32 %v1374_v38, %v1772_v31  ;;  %v1794_v49 = vadd.f32 %v1390_v39, %v1772_v31 }
  0xe1   :  { %465 = vmax.xlane.f32.xlu0 %v1778_v37  ;;  %v1799_v54 = vadd.f32 %v1772_v31, %v307_v42  ;;  %v1802_v55 = vadd.f32 %v1772_v31, %v243_v41  ;;  %v1902_v42 = vpop.permute.xlu1 %757 }
  0xe4   :  { %501 = vmax.xlane.f32.xlu1 %v1781_v40 }
  0xe5   :  { %497 = vmax.xlane.f32.xlu0 %v1785_v43  ;;  %v1393_v44 = vpop.f32.mrb[4].mxu1  ;;  %v1377_v45 = vpop.f32.mrb[4].mxu0 }
  0xe6   :  { %v320_v47 = vpop.f32.mrb[5].mxu1  ;;  %v256_v48 = vpop.f32.mrb[5].mxu0  ;;  %v1806_v56 = vadd.f32 %v1393_v44, %v1772_v31  ;;  %v1810_v57 = vadd.f32 %v1377_v45, %v1772_v31 }
  0xe7   :  { %v1378_v50 = vpop.f32.mrb[6].mxu0  ;;  %v1394_v51 = vpop.f32.mrb[6].mxu1  ;;  %v1814_v0 = vadd.f32 %v1772_v31, %v320_v47  ;;  %v1818_v3 = vadd.f32 %v1772_v31, %v256_v48 }
  0xe8   :  { %471 = vmax.xlane.f32.xlu1 %v1791_v46  ;;  %v259_v52 = vpop.f32.mrb[7].mxu0  ;;  %v323_v53 = vpop.f32.mrb[7].mxu1  ;;  %v1822_v4 = vadd.f32 %v1378_v50, %v1772_v31  ;;  %v1826_v5 = vadd.f32 %v1394_v51, %v1772_v31 }
  0xe9   :  { %503 = vmax.xlane.f32.xlu0 %v1794_v49  ;;  %v1830_v12 = vadd.f32 %v1772_v31, %v259_v52  ;;  %v1834_v20 = vadd.f32 %v1772_v31, %v323_v53  ;;  %v1904_v44 = vpop.permute.xlu0 %754  ;;  %v1906_v45 = vpop.permute.xlu1 %763 }
  0xec   :  { %499 = vmax.xlane.f32.xlu1 %v1799_v54 }
  0xed   :  { %467 = vmax.xlane.f32.xlu0 %v1802_v55  ;;  %v1397_v58 = vpop.f32.mrb[8].mxu1  ;;  %v1381_v59 = vpop.f32.mrb[8].mxu0 }
  0xee   :  { %v336_v60 = vpop.f32.mrb[9].mxu1  ;;  %v272_v61 = vpop.f32.mrb[9].mxu0  ;;  %v1842_v22 = vadd.f32 %v1381_v59, %v1772_v31  ;;  %v1877_v33 = vadd.f32 %v1397_v58, %v1772_v31 }
  0xef   :  { %v1382_v62 = vpop.f32.mrb[10].mxu0  ;;  %v1398_v63 = vpop.f32.mrb[10].mxu1  ;;  %v1838_v21 = vadd.f32 %v1772_v31, %v336_v60  ;;  %v1849_v24 = vadd.f32 %v1772_v31, %v272_v61 }
  0xf0   :  { %509 = vmax.xlane.f32.xlu1 %v1806_v56  ;;  %v275_v1 = vpop.f32.mrb[11].mxu0  ;;  %v339_v2 = vpop.f32.mrb[11].mxu1  ;;  %v1846_v23 = vadd.f32 %v1382_v62, %v1772_v31  ;;  %2753 = vst [vmem:[#allocation12_spill] sm:$0xff] %v1877_v33  ;;  %v1881_v35 = vadd.f32 %v1398_v63, %v1772_v31 }
  0xf1   :  { %477 = vmax.xlane.f32.xlu0 %v1810_v57  ;;  %2751 = vst [vmem:[#allocation10_spill] sm:$0xff] %v1838_v21  ;;  %v1854_v26 = vadd.f32 %v1772_v31, %v275_v1  ;;  %v1858_v27 = vadd.f32 %v1772_v31, %v339_v2  ;;  %v1908_v47 = vpop.permute.xlu0 %760  ;;  %v1910_v48 = vpop.permute.xlu1 %769 }
  0xf2   :  { %2754 = vst [vmem:[#allocation13_spill] sm:$0xff] %v1881_v35 }
  0xf3   :  { %2752 = vst [vmem:[#allocation11_spill] sm:$0xff] %v1858_v27 }
  0xf4   :  { %505 = vmax.xlane.f32.xlu1 %v1814_v0 }
  0xf5   :  { %473 = vmax.xlane.f32.xlu0 %v1818_v3  ;;  %v1385_v6 = vpop.f32.mrb[12].mxu0  ;;  %v1401_v7 = vpop.f32.mrb[12].mxu1 }
  0xf6   :  { %v288_v8 = vpop.f32.mrb[13].mxu0  ;;  %v352_v9 = vpop.f32.mrb[13].mxu1  ;;  %v1865_v29 = vadd.f32 %v1385_v6, %v1772_v31  ;;  %v1893_v39 = vadd.f32 %v1401_v7, %v1772_v31 }
  0xf7   :  { %v1386_v10 = vpop.f32.mrb[14].mxu0  ;;  %v1402_v11 = vpop.f32.mrb[14].mxu1  ;;  %v1873_v32 = vadd.f32 %v1772_v31, %v288_v8  ;;  %v1885_v36 = vadd.f32 %v1772_v31, %v352_v9 }
  0xf8   :  { %479 = vmax.xlane.f32.xlu1 %v1822_v4  ;;  %v291_v17 = vpop.f32.mrb[15].mxu0  ;;  %v355_v19 = vpop.f32.mrb[15].mxu1  ;;  %v1862_v28 = vadd.f32 %v1386_v10, %v1772_v31  ;;  %2757 = vst [vmem:[#allocation16_spill] sm:$0xff] %v1893_v39  ;;  %v1897_v41 = vadd.f32 %v1402_v11, %v1772_v31  ;;  %v1939_v10 = vld [vmem:[%s2671_s0 + $0x38] sm:$0xff] }
  0xf9   :  { %511 = vmax.xlane.f32.xlu0 %v1826_v5  ;;  %v1870_v30 = vadd.f32 %v1772_v31, %v291_v17  ;;  %2755 = vst [vmem:[#allocation14_spill] sm:$0xff] %v1885_v36  ;;  %v1890_v38 = vadd.f32 %v1772_v31, %v355_v19  ;;  %v1912_v50 = vpop.permute.xlu0 %766  ;;  %vm406_vm7 = vcmp.ne.s32.totalorder %v1939_v10, 4294967196  ;;  %v1954_v17 = vld [vmem:[%s2671_s0 + $0x58] sm:$0xff] }
  0xfa   :  { %2758 = vst [vmem:[#allocation17_spill] sm:$0xff] %v1897_v41  ;;  %v438_v11 = vsel %vm406_vm7, %v1939_v10, 0  ;;  %vm2746_vm9 = vcmp.ne.s32.totalorder %v1954_v17, 4294967196 }
  0xfb   :  { %2756 = vst [vmem:[#allocation15_spill] sm:$0xff] %v1890_v38 }
  0xfc   :  { %475 = vmax.xlane.f32.xlu1 %v1830_v12 }
  0xfd   :  { %507 = vmax.xlane.f32.xlu0 %v1834_v20 }
 0x100   :  { %513 = vmax.xlane.f32.xlu1 %v1838_v21 }
 0x101   :  { %485 = vmax.xlane.f32.xlu0 %v1842_v22 }
 0x104   :  { %487 = vmax.xlane.f32.xlu1 %v1846_v23 }
 0x105   :  { %481 = vmax.xlane.f32.xlu0 %v1849_v24 }
 0x108   :  { %483 = vmax.xlane.f32.xlu1 %v1854_v26 }
 0x109   :  { %515 = vmax.xlane.f32.xlu0 %v1858_v27 }
 0x10c   :  { %495 = vmax.xlane.f32.xlu1 %v1862_v28 }
 0x10d   :  { %493 = vmax.xlane.f32.xlu0 %v1865_v29 }
 0x110   :  { %491 = vmax.xlane.f32.xlu1 %v1870_v30 }
 0x111   :  { %489 = vmax.xlane.f32.xlu0 %v1873_v32 }
 0x114   :  { %517 = vmax.xlane.f32.xlu1 %v1877_v33 }
 0x115   :  { %519 = vmax.xlane.f32.xlu0 %v1881_v35 }
 0x118   :  { %521 = vmax.xlane.f32.xlu1 %v1885_v36 }
 0x119   :  { %523 = vmax.xlane.f32.xlu0 %v1890_v38 }
 0x11c   :  { %525 = vmax.xlane.f32.xlu1 %v1893_v39 }
 0x11d   :  { %527 = vmax.xlane.f32.xlu0 %v1897_v41 }
 0x16d   :  { %v470_v31 = vpop.xlane.xlu1 %469 }
 0x16e   :  { %v1915_v51 = vsub.f32 %v1775_v34, %v470_v31  ;;  %v466_v52 = vpop.xlane.xlu0 %465  ;;  %v1963_v31 = vld [vmem:[%s2671_s0 + $0x68] sm:$0xff] }
 0x16f   :  { %v1918_v53 = vsub.f32 %v1778_v37, %v466_v52  ;;  %2759 = vst [vmem:[#allocation18_spill] sm:$0xff] %v1963_v31  ;;  %v442_v52 = vsel %vm2746_vm9, %v1954_v17, 0  ;;  %vm2681_vm10 = vcmp.ne.s32.totalorder %v1963_v31, 4294967196 }
 0x170   :  { %v565_v58 = vmul.f32 1.442695, %v1915_v51 }
 0x171   :  { %v1921_v59 = vpop.xlane.xlu1 %501  ;;  %v561_v60 = vmul.f32 1.442695, %v1918_v53 }
 0x172   :  { %1435 = vpow2.f32 %v565_v58  ;;  %v1924_v61 = vpop.xlane.xlu0 %497  ;;  %v1971_v58 = vld [vmem:[%s2671_s0 + $0x30] sm:$0xff] }
 0x173   :  { %1437 = vpow2.f32 %v561_v60  ;;  %v1977_v60 = vld [vmem:[%s2671_s0 + $0x78] sm:$0xff]  ;;  %vm405_vm11 = vcmp.ne.s32.totalorder %v1971_v58, 4294967196 }
 0x174   :  { %2760 = vst [vmem:[#allocation19_spill] sm:$0xff] %v1977_v60  ;;  %vm2678_vm12 = vcmp.ne.s32.totalorder %v1977_v60, 4294967196 }
 0x175   :  { %v472_v62 = vpop.xlane.xlu1 %471 }
 0x176   :  { %v1927_v63 = vsub.f32 %v1791_v46, %v472_v62  ;;  %v1929_v34 = vpop.xlane.xlu0 %503  ;;  %v444_v62 = vsel %vm2681_vm10, %v1963_v31, 0 }
 0x178   :  { %v567_v1 = vmul.f32 1.442695, %v1927_v63 }
 0x17a   :  { %1439 = vpow2.f32 %v567_v1  ;;  %v468_v37 = vpop.xlane.xlu0 %467  ;;  %v1986_v1 = vld [vmem:[%s2671_s0 + $0x40] sm:$0xff] }
 0x17b   :  { %v1933_v2 = vsub.f32 %v1802_v55, %v468_v37  ;;  %v1945_v55 = vld [vmem:[%s2671_s0 + $0x48] sm:$0xff]  ;;  %v437_v37 = vsel %vm405_vm11, %v1971_v58, 0  ;;  %vm407_vm13 = vcmp.ne.s32.totalorder %v1986_v1, 4294967196 }
 0x17c   :  { %v1436_v6 = vpop.eup %1435  ;;  %vm408_vm8 = vcmp.ne.s32.totalorder %v1945_v55, 4294967196 }
 0x17d   :  { %v563_v7 = vmul.f32 1.442695, %v1933_v2  ;;  %629 = vadd.xlane.f32.xlu1 %v1436_v6  ;;  %v1438_v8 = vpop.eup %1437  ;;  %v440_v19 = vsel %vm408_vm8, %v1945_v55, 0  ;;  %v1995_v6 = vld [vmem:[%s2671_s0 + $0x80] sm:$0xff] }
 0x17e   :  { %2761 = vst [vmem:[#allocation20_spill] sm:$0xff] %v1995_v6  ;;  %vm2677_vm14 = vcmp.ne.s32.totalorder %v1995_v6, 4294967196 }
 0x17f   :  { %1441 = vpow2.f32 %v563_v7  ;;  %v446_v7 = vsel %vm2678_vm12, %v1977_v60, 0  ;;  %v463_v60 = vlaneseq }
 0x181   :  { %625 = vadd.xlane.f32.xlu1 %v1438_v8  ;;  %v2004_v8 = vld [vmem:[%s2671_s0 + $0x50] sm:$0xff] }
 0x182   :  { %vm2747_vm15 = vcmp.ne.s32.totalorder %v2004_v8, 4294967196 }
 0x184   :  { %v1440_v9 = vpop.eup %1439 }
 0x185   :  { %631 = vadd.xlane.f32.xlu0 %v1440_v9  ;;  %v439_v9 = vsel %vm407_vm13, %v1986_v1, 0 }
 0x189   :  { %v1442_v46 = vpop.eup %1441 }
 0x18a   :  { %627 = vadd.xlane.f32.xlu0 %v1442_v46  ;;  %v2013_v46 = vld [vmem:[%s2671_s0 + $0x88] sm:$0xff] }
 0x18b   :  { %2762 = vst [vmem:[#allocation21_spill] sm:$0xff] %v2013_v46  ;;  %vm2679_vm0 = vcmp.ne.s32.totalorder %v2013_v46, 4294967196 }
 0x192   :  { %775 = vperm.xlu1 %1416, %v438_v11   ;;  %v447_v11 = vsel %vm2677_vm14, %v1995_v6, 0 }
 0x196   :  { %781 = vperm.xlu1 %1416, %v440_v19   ;;  %v2022_v19 = vld [vmem:[%s2671_s0 + $0x60] sm:$0xff] }
 0x197   :  { %vm2709_vm14 = vcmp.ne.s32.totalorder %v2022_v19, 4294967196 }
 0x19a   :  { %787 = vperm.xlu1 %1416, %v442_v52   ;;  %v441_v52 = vsel %vm2747_vm15, %v2004_v8, 0 }
 0x19e   :  { %793 = vperm.xlu1 %1416, %v444_v62   ;;  %v2031_v62 = vld [vmem:[%s2671_s0 + $0x90] sm:$0xff] }
 0x19f   :  { %2763 = vst [vmem:[#allocation22_spill] sm:$0xff] %v2031_v62  ;;  %vm2683_vm12 = vcmp.ne.s32.totalorder %v2031_v62, 4294967196 }
 0x1a0   :  { %772 = vperm.xlu0 %1415, %v437_v37   ;;  %v448_v37 = vsel %vm2679_vm0, %v2013_v46, 0  ;;  %v449_v41 = vsel %vm2683_vm12, %v2031_v62, 0  ;;  %v2154_v46 = vld [vmem:[%s2671_s0 + $0xe8] sm:$0xff] }
 0x1a1   :  { %2776 = vst [vmem:[#allocation35_spill] sm:$0xff] %v2154_v46 }
 0x1a2   :  { %799 = vperm.xlu1 %1416, %v446_v7   ;;  %v2040_v7 = vld [vmem:[%s2671_s0 + $0x70] sm:$0xff] }
 0x1a3   :  { %2764 = vst [vmem:[#allocation23_spill] sm:$0xff] %v2040_v7  ;;  %vm2686_vm0 = vcmp.ne.s32.totalorder %v2040_v7, 4294967196 }
 0x1a4   :  { %778 = vperm.xlu0 %1415, %v439_v9   ;;  %v443_v9 = vsel %vm2709_vm14, %v2022_v19, 0  ;;  %v445_v39 = vsel %vm2686_vm0, %v2040_v7, 0 }
 0x1a6   :  { %802 = vperm.xlu1 %1416, %v447_v11   ;;  %v2049_v11 = vld [vmem:[%s2671_s0 + $0xa0] sm:$0xff] }
 0x1a7   :  { %2765 = vst [vmem:[#allocation24_spill] sm:$0xff] %v2049_v11  ;;  %vm2688_vm10 = vcmp.ne.s32.totalorder %v2049_v11, 4294967196 }
 0x1a8   :  { %784 = vperm.xlu0 %1415, %v441_v52   ;;  %v2058_v52 = vld [vmem:[%s2671_s0 + $0x98] sm:$0xff]  ;;  %v451_v62 = vsel %vm2688_vm10, %v2049_v11, 0 }
 0x1a9   :  { %2766 = vst [vmem:[#allocation25_spill] sm:$0xff] %v2058_v52  ;;  %vm2691_vm12 = vcmp.ne.s32.totalorder %v2058_v52, 4294967196 }
 0x1aa   :  { %805 = vperm.xlu1 %1416, %v448_v37   ;;  %v2067_v37 = vld [vmem:[%s2671_s0 + $0xa8] sm:$0xff]  ;;  %v450_v38 = vsel %vm2691_vm12, %v2058_v52, 0 }
 0x1ab   :  { %2767 = vst [vmem:[#allocation26_spill] sm:$0xff] %v2067_v37  ;;  %vm2694_vm0 = vcmp.ne.s32.totalorder %v2067_v37, 4294967196 }
 0x1ac   :  { %790 = vperm.xlu0 %1415, %v443_v9   ;;  %v2076_v9 = vld [vmem:[%s2671_s0 + $0xc8] sm:$0xff]  ;;  %v452_v11 = vsel %vm2694_vm0, %v2067_v37, 0 }
 0x1ad   :  { %2768 = vst [vmem:[#allocation27_spill] sm:$0xff] %v2076_v9  ;;  %vm2697_vm10 = vcmp.ne.s32.totalorder %v2076_v9, 4294967196 }
 0x1ae   :  { %808 = vperm.xlu1 %1416, %v449_v41   ;;  %v2085_v41 = vld [vmem:[%s2671_s0 + $0xb0] sm:$0xff]  ;;  %v456_v52 = vsel %vm2697_vm10, %v2076_v9, 0 }
 0x1af   :  { %2769 = vst [vmem:[#allocation28_spill] sm:$0xff] %v2085_v41  ;;  %vm2700_vm12 = vcmp.ne.s32.totalorder %v2085_v41, 4294967196 }
 0x1b0   :  { %796 = vperm.xlu0 %1415, %v445_v39   ;;  %v2094_v39 = vld [vmem:[%s2671_s0 + $0xd8] sm:$0xff]  ;;  %v453_v37 = vsel %vm2700_vm12, %v2085_v41, 0 }
 0x1b1   :  { %2770 = vst [vmem:[#allocation29_spill] sm:$0xff] %v2094_v39  ;;  %vm2703_vm0 = vcmp.ne.s32.totalorder %v2094_v39, 4294967196 }
 0x1b2   :  { %814 = vperm.xlu1 %1416, %v451_v62   ;;  %v2103_v62 = vld [vmem:[%s2671_s0 + $0xb8] sm:$0xff]  ;;  %v458_v9 = vsel %vm2703_vm0, %v2094_v39, 0 }
 0x1b3   :  { %2771 = vst [vmem:[#allocation30_spill] sm:$0xff] %v2103_v62  ;;  %vm2706_vm10 = vcmp.ne.s32.totalorder %v2103_v62, 4294967196 }
 0x1b4   :  { %811 = vperm.xlu0 %1415, %v450_v38   ;;  %v2112_v38 = vld [vmem:[%s2671_s0 + $0xe0] sm:$0xff]  ;;  %v454_v41 = vsel %vm2706_vm10, %v2103_v62, 0 }
 0x1b5   :  { %2772 = vst [vmem:[#allocation31_spill] sm:$0xff] %v2112_v38  ;;  %vm2714_vm12 = vcmp.ne.s32.totalorder %v2112_v38, 4294967196 }
 0x1b6   :  { %817 = vperm.xlu1 %1416, %v452_v11   ;;  %v2121_v11 = vld [vmem:[%s2671_s0 + $0xc0] sm:$0xff]  ;;  %v459_v39 = vsel %vm2714_vm12, %v2112_v38, 0  ;;  %vm2739_vm12 = vcmp.ne.s32.totalorder %v2154_v46, 4294967196 }
 0x1b7   :  { %2773 = vst [vmem:[#allocation32_spill] sm:$0xff] %v2121_v11  ;;  %vm2748_vm0 = vcmp.ne.s32.totalorder %v2121_v11, 4294967196 }
 0x1b8   :  { %829 = vperm.xlu0 %1415, %v456_v52   ;;  %v2130_v52 = vld [vmem:[%s2671_s0 + $0xf8] sm:$0xff]  ;;  %v455_v62 = vsel %vm2748_vm0, %v2121_v11, 0  ;;  %v460_v11 = vsel %vm2739_vm12, %v2154_v46, 0 }
 0x1b9   :  { %2774 = vst [vmem:[#allocation33_spill] sm:$0xff] %v2130_v52  ;;  %vm2719_vm10 = vcmp.ne.s32.totalorder %v2130_v52, 4294967196 }
 0x1ba   :  { %820 = vperm.xlu1 %1416, %v453_v37   ;;  %v2139_v37 = vld [vmem:[%s2671_s0 + $0xd0] sm:$0xff]  ;;  %v462_v38 = vsel %vm2719_vm10, %v2130_v52, 0 }
 0x1bb   :  { %2775 = vst [vmem:[#allocation34_spill] sm:$0xff] %v2139_v37  ;;  %vm425_vm14 = vcmp.ne.s32.totalorder %v2139_v37, 4294967196 }
 0x1bc   :  { %835 = vperm.xlu0 %1415, %v458_v9   ;;  %v2146_v9 = vpop.xlane.xlu1 %499 }
 0x1be   :  { %823 = vperm.xlu1 %1416, %v454_v41   ;;  %v457_v41 = vsel %vm425_vm14, %v2139_v37, 0  ;;  %v478_v37 = vpop.xlane.xlu0 %477 }
 0x1c0   :  { %838 = vperm.xlu0 %1415, %v459_v39   ;;  %v2163_v39 = vld [vmem:[%s2671_s0 + $0xf0] sm:$0xff]  ;;  %v2165_v52 = vpop.xlane.xlu1 %509  ;;  %s1613_s0 = smov [#allocation2]  }
 0x1c1   :  { %2777 = vst [vmem:[#allocation36_spill] sm:$0xff] %v2163_v39  ;;  %vm2733_vm10 = vcmp.ne.s32.totalorder %v2163_v39, 4294967196  ;;  %s1260_s12 = sshll.u32 %s1613_s0, 4  ;;  %s1261_s12 = int_to_ptr.vmem [resolvable:$true] %s1260_s12 }
 0x1c2   :  { %826 = vperm.xlu1 %1416, %v455_v62   ;;  %v461_v62 = vsel %vm2733_vm10, %v2163_v39, 0  ;;  %v474_v6 = vpop.xlane.xlu0 %473  ;;  %s1563_s3 = scalar_lea.vmem %s1261_s12, 128  ;;  %p1568_p1 = scmp.lt.s32.totalorder %s1261_s12, %s1261_s12 }
 0x1c3   :  { %v2179_v33 = vsub.f32 %v1818_v3, %v474_v6  ;;  %p1564_p0 = scmp.ne.s32.totalorder %s1261_s12, %s1563_s3  ;;  %p1569_p2 = scmp.lt.s32.totalorder %s1563_s3, %s1563_s3 }
 0x1c4   :  { %847 = vperm.xlu0 %1415, %v462_v38   ;;  %v2174_v38 = vpop.xlane.xlu1 %505 }
 0x1c5   :  { %v569_v27 = vmul.f32 1.442695, %v2179_v33  ;;  %p1570_p3 = por %p1569_p2, %p1568_p1 }
 0x1c6   :  { %832 = vperm.xlu1 %1416, %v457_v41   ;;  %v2176_v35 = vpop.xlane.xlu0 %511 }
 0x1c7   :  { %1443 = vpow2.f32 %v569_v27  ;;  %p1571_p4 = pnand %p1570_p3, %p1564_p0 }
 0x1c8   :  { %v480_v36 = vpop.xlane.xlu1 %479 }
 0x1ca   :  { %841 = vperm.xlu1 %1416, %v460_v11   ;;  %v2183_v11 = vand.u32 127, %v463_v60  ;;  %v2185_v7 = vpop.xlane.xlu0 %507  ;;  %v2195_v60 = vsub.f32 %v1810_v57, %v478_v37 }
 0x1cc   :  { %v476_v41 = vpop.xlane.xlu1 %475  ;;  %vm849_vm10 = vcmp.eq.s32.totalorder %v2183_v11, %v1904_v44  ;;  %vm854_vm12 = vcmp.eq.s32.totalorder %v2183_v11, %v1910_v48  ;;  %v573_v44 = vmul.f32 1.442695, %v2195_v60 }
 0x1cd   :  { %v881_v39 = vsel %vm849_vm10, %v1918_v53, 0.0  ;;  %vm850_vm10 = vcmp.eq.s32.totalorder %v2183_v11, %v1902_v42 }
 0x1ce   :  { %844 = vperm.xlu1 %1416, %v461_v62   ;;  %v534_v62 = vsub.f32 %v1830_v12, %v476_v41  ;;  %v486_v21 = vpop.xlane.xlu0 %485  ;;  %v2199_v12 = vsub.f32 %v1822_v4, %v480_v36 }
 0x1d0   :  { %v2181_v46 = vpop.xlane.xlu1 %513  ;;  %v886_v3 = vsel %vm854_vm12, %v534_v62, 0.0  ;;  %v571_v6 = vmul.f32 1.442695, %v534_v62  ;;  %v575_v41 = vmul.f32 1.442695, %v2199_v12  ;;  %vm851_vm12 = vcmp.eq.s32.totalorder %v2183_v11, %v1908_v47 }
 0x1d1   :  { %2778 = vst [vmem:[#allocation37_spill] sm:$0xff] %v2181_v46  ;;  %v1444_v48 = vpop.eup %1443  ;;  %v883_v42 = vsel %vm851_vm12, %v1915_v51, 0.0  ;;  %vm1041_vm12 = vcmask 7168  }
 0x1d2   :  { %1445 = vpow2.f32 %v571_v6 }
 0x1d3   :  { %1447 = vpow2.f32 %v573_v44 }
 0x1d4   :  { %v488_v31 = vpop.xlane.xlu1 %487  ;;  %1449 = vpow2.f32 %v575_v41  ;;  %v882_v41 = vsel %vm850_vm10, %v1933_v2, 0.0  ;;  %vm852_vm10 = vcmp.eq.s32.totalorder %v2183_v11, %v1906_v45  ;;  %v1319_v45 = vsel %vm401_vm4, 1.0, %v2780_v15 }
 0x1d8   :  { %v484_v53 = vpop.xlane.xlu1 %483 }
 0x1d9   :  { %v2211_v6 = vsub.f32 %v1854_v26, %v484_v53 }
 0x1dc   :  { %v2202_v46 = vpop.xlane.xlu1 %495  ;;  %v1446_v37 = vpop.eup %1445 }
 0x1dd   :  { %v1448_v62 = vpop.eup %1447 }
 0x1de   :  { %v1450_v44 = vpop.eup %1449 }
 0x1e0   :  { %v492_v36 = vpop.xlane.xlu1 %491 }
 0x1e3   :  { %913 = vadd.xlane.f32.xlu0 %v881_v39  ;;  %v482_v39 = vpop.xlane.xlu0 %481 }
 0x1e4   :  { %v2205_v57 = vsub.f32 %v1849_v24, %v482_v39  ;;  %v579_v24 = vmul.f32 1.442695, %v2211_v6 }
 0x1e6   :  { %v577_v4 = vmul.f32 1.442695, %v2205_v57 }
 0x1e7   :  { %923 = vadd.xlane.f32.xlu0 %v886_v3  ;;  %v2207_v27 = vpop.xlane.xlu0 %515 }
 0x1e8   :  { %1451 = vpow2.f32 %v577_v4 }
 0x1e9   :  { %1453 = vpow2.f32 %v579_v24 }
 0x1eb   :  { %v494_v3 = vpop.xlane.xlu0 %493 }
 0x1ef   :  { %v490_v39 = vpop.xlane.xlu0 %489 }
 0x1f0   :  { %v2244_v51 = vsub.f32 %v1873_v32, %v490_v39  ;;  %v2257_v32 = vsub.f32 %v1870_v30, %v492_v36  ;;  %v1320_v36 = vsel %vm402_vm2, 1.0, %v2780_v15 }
 0x1f2   :  { %633 = vadd.xlane.f32.xlu1 %v1444_v48  ;;  %v2213_v48 = vpop.xlane.xlu1 %517  ;;  %v1452_v26 = vpop.eup %1451  ;;  %v585_v39 = vmul.f32 1.442695, %v2244_v51  ;;  %v587_v30 = vmul.f32 1.442695, %v2257_v32 }
 0x1f3   :  { %v2224_v53 = vpop.xlane.xlu0 %519  ;;  %v1454_v2 = vpop.eup %1453 }
 0x1f6   :  { %635 = vadd.xlane.f32.xlu1 %v1446_v37  ;;  %v2220_v37 = vsub.f32 %v1842_v22, %v486_v21  ;;  %v2222_v4 = vpop.xlane.xlu1 %521  ;;  %v2233_v21 = vsub.f32 %v1846_v23, %v488_v31 }
 0x1f7   :  { %v2235_v22 = vpop.xlane.xlu0 %523 }
 0x1fa   :  { %637 = vadd.xlane.f32.xlu1 %v1448_v62  ;;  %v581_v62 = vmul.f32 1.442695, %v2220_v37 }
 0x1fb   :  { %v2251_v31 = vpop.xlane.xlu0 %527 }
 0x1fc   :  { %1455 = vpow2.f32 %v581_v62  ;;  %v884_v62 = vsel %vm852_vm10, %v1927_v63, 0.0  ;;  %vm853_vm10 = vcmp.eq.s32.totalorder %v2183_v11, %v1912_v50  ;;  %v1321_v50 = vsel %vm2745_vm6, 1.0, %v2780_v15 }
 0x1fe   :  { %639 = vadd.xlane.f32.xlu1 %v1450_v44  ;;  %v2229_v44 = vpop.xlane.xlu1 %525 }
 0x202   :  { %915 = vadd.xlane.f32.xlu1 %v882_v41  ;;  %v2741_v41 = vmov 0.0  }
 0x203   :  { %v1318_v47 = vsel %vm400_vm1, 1.0, %v2741_v41  ;;  %v1317_v23 = vsel %vm399_vm3, 1.0, %v2741_v41 }
 0x206   :  { %641 = vadd.xlane.f32.xlu1 %v1452_v26  ;;  %v583_v26 = vmul.f32 1.442695, %v2233_v21  ;;  %v1456_v13 = vpop.eup %1455 }
 0x208   :  { %1457 = vpow2.f32 %v583_v26  ;;  %v2269_v26 = vsub.f32 %v1865_v29, %v494_v3  ;;  %v2281_v29 = vsub.f32 %v1862_v28, %v2202_v46 }
 0x209   :  { %1459 = vpow2.f32 %v585_v39 }
 0x20a   :  { %917 = vadd.xlane.f32.xlu1 %v883_v42  ;;  %v2237_v24 = vpop.xlane.xlu1 %629  ;;  %v1181_v42 = vsel %vm1041_vm12, %v1318_v47, 0.0  ;;  %v1183_v47 = vsel %vm1041_vm12, %v1319_v45, 0.0  ;;  %v589_v3 = vmul.f32 1.442695, %v2269_v26  ;;  %1461 = vpow2.f32 %v587_v30 }
 0x20b   :  { %2779 = vst [vmem:[#allocation38_spill] sm:$0xff] %v2237_v24  ;;  %v591_v28 = vmul.f32 1.442695, %v2281_v29  ;;  %v1322_v30 = vsel %vm404_vm5, 1.0, %v2780_v15 }
 0x20c   :  { %1463 = vpow2.f32 %v589_v3 }
 0x20d   :  { %1465 = vpow2.f32 %v591_v28  ;;  %v1324_v28 = vsel %vm406_vm7, 1.0, %v2780_v15 }
 0x20e   :  { %643 = vadd.xlane.f32.xlu1 %v1454_v2  ;;  %v1180_v2 = vsel %vm1041_vm12, %v1317_v23, 0.0  ;;  %v2260_v41 = vpop.xlane.xlu1 %625 }
 0x20f   :  { %v1182_v63 = vadd.f32 %v1181_v42, %v1180_v2 }
 0x211   :  { %v1184_v42 = vadd.f32 %v1183_v47, %v1182_v63  ;;  %v2292_v63 = vsub.f32 %v1785_v43, %v1924_v61  ;;  %v1189_v43 = vsel %vm1041_vm12, %v1322_v30, 0.0 }
 0x212   :  { %919 = vadd.xlane.f32.xlu1 %v884_v62  ;;  %v2265_v24 = vpop.xlane.xlu0 %631  ;;  %v776_v23 = vpop.permute.xlu1 %775  ;;  %v885_v62 = vsel %vm853_vm10, %v2179_v33, 0.0  ;;  %v1187_v33 = vsel %vm1041_vm12, %v1321_v50, 0.0  ;;  %v1323_v50 = vsel %vm405_vm11, 1.0, %v2780_v15 }
 0x213   :  { %v1458_v39 = vpop.eup %1457  ;;  %vm856_vm6 = vcmp.eq.s32.totalorder %v2183_v11, %v776_v23  ;;  %v593_v61 = vmul.f32 1.442695, %v2292_v63  ;;  %v2314_v23 = vsub.f32 %v1781_v40, %v1921_v59  ;;  %v2326_v59 = vsub.f32 %v1794_v49, %v1929_v34 }
 0x214   :  { %v2337_v34 = vsub.f32 %v1814_v0, %v2174_v38  ;;  %v2348_v0 = vsub.f32 %v1834_v20, %v2185_v7 }
 0x215   :  { %1467 = vpow2.f32 %v593_v61  ;;  %v597_v40 = vmul.f32 1.442695, %v2314_v23  ;;  %v599_v49 = vmul.f32 1.442695, %v2326_v59 }
 0x216   :  { %645 = vadd.xlane.f32.xlu1 %v1456_v13  ;;  %v1185_v13 = vsel %vm1041_vm12, %v1320_v36, 0.0  ;;  %v782_v46 = vpop.permute.xlu1 %781  ;;  %v1460_v36 = vpop.eup %1459  ;;  %v603_v20 = vmul.f32 1.442695, %v2348_v0 }
 0x217   :  { %v2284_v2 = vpop.xlane.xlu0 %627  ;;  %v1186_v45 = vadd.f32 %v1185_v13, %v1184_v42  ;;  %v2305_v13 = vsub.f32 %v1799_v54, %v2146_v9  ;;  %v1191_v9 = vsel %vm1041_vm12, %v1323_v50, 0.0  ;;  %v1326_v50 = vsel %vm408_vm8, 1.0, %v2780_v15 }
 0x218   :  { %v1197_v38 = vsel %vm1041_vm12, %v1326_v50, 0.0 }
 0x219   :  { %v1188_v42 = vadd.f32 %v1187_v33, %v1186_v45  ;;  %v888_v45 = vsel %vm856_vm6, %v2199_v12, 0.0  ;;  %v595_v54 = vmul.f32 1.442695, %v2305_v13  ;;  %vm858_vm6 = vcmp.eq.s32.totalorder %v2183_v11, %v782_v46 }
 0x21a   :  { %921 = vadd.xlane.f32.xlu1 %v885_v62  ;;  %v890_v61 = vsel %vm858_vm6, %v2211_v6, 0.0 }
 0x21b   :  { %v1190_v33 = vadd.f32 %v1189_v43, %v1188_v42  ;;  %1469 = vpow2.f32 %v595_v54  ;;  %v601_v54 = vmul.f32 1.442695, %v2337_v34 }
 0x21c   :  { %1471 = vpow2.f32 %v597_v40  ;;  %v1328_v40 = vsel %vm2746_vm9, 1.0, %v2780_v15  ;;  %vm2781_vm9 = vcmp.ne.s32.totalorder %v2022_v19, 4294967196 }
 0x21d   :  { %v1192_v30 = vadd.f32 %v1191_v9, %v1190_v33  ;;  %1473 = vpow2.f32 %v599_v49 }
 0x21e   :  { %647 = vadd.xlane.f32.xlu1 %v1458_v39  ;;  %v788_v39 = vpop.permute.xlu1 %787  ;;  %1475 = vpow2.f32 %v601_v54 }
 0x21f   :  { %v773_v47 = vpop.permute.xlu0 %772  ;;  %vm860_vm6 = vcmp.eq.s32.totalorder %v2183_v11, %v788_v39  ;;  %v2358_v39 = vsub.f32 %v1806_v56, %v2165_v52  ;;  %v2370_v52 = vsub.f32 %v1826_v5, %v2176_v35  ;;  %1477 = vpow2.f32 %v603_v20  ;;  %v2782_v35 = vld [vmem:[#allocation37_spill] sm:$0xff]  ;;  %v2787_v20 = vld [vmem:[#allocation23_spill] sm:$0xff] }
 0x220   :  { %vm855_vm10 = vcmp.eq.s32.totalorder %v2183_v11, %v773_v47 }
 0x221   :  { %v887_v62 = vsel %vm855_vm10, %v2195_v60, 0.0  ;;  %v1462_v60 = vpop.eup %1461  ;;  %v605_v56 = vmul.f32 1.442695, %v2358_v39  ;;  %v607_v5 = vmul.f32 1.442695, %v2370_v52 }
 0x222   :  { %649 = vadd.xlane.f32.xlu1 %v1460_v36  ;;  %925 = vadd.xlane.f32.xlu0 %v887_v62  ;;  %v1464_v47 = vpop.eup %1463  ;;  %v1193_v36 = vsel %vm1041_vm12, %v1324_v28, 0.0  ;;  %v794_v62 = vpop.permute.xlu1 %793  ;;  %v1327_v28 = vsel %vm2747_vm15, 1.0, %v2780_v15 }
 0x223   :  { %v779_v3 = vpop.permute.xlu0 %778  ;;  %v1466_v43 = vpop.eup %1465  ;;  %v1199_v7 = vsel %vm1041_vm12, %v1327_v28, 0.0  ;;  %1479 = vpow2.f32 %v605_v56  ;;  %v2786_v28 = vld [vmem:[#allocation11_spill] sm:$0xff] }
 0x224   :  { %vm857_vm10 = vcmp.eq.s32.totalorder %v2183_v11, %v779_v3  ;;  %v1194_v3 = vadd.f32 %v1193_v36, %v1192_v30  ;;  %1481 = vpow2.f32 %v607_v5  ;;  %v2790_v56 = vld [vmem:[#allocation19_spill] sm:$0xff]  ;;  %v2793_v5 = vld [vmem:[#allocation20_spill] sm:$0xff] }
 0x225   :  { %v889_v12 = vsel %vm857_vm10, %v2205_v57, 0.0  ;;  %v1325_v57 = vsel %vm407_vm13, 1.0, %v2780_v15 }
 0x226   :  { %651 = vadd.xlane.f32.xlu1 %v1462_v60  ;;  %927 = vadd.xlane.f32.xlu0 %v888_v45  ;;  %v1195_v46 = vsel %vm1041_vm12, %v1325_v57, 0.0  ;;  %v1468_v60 = vpop.eup %1467  ;;  %v800_v6 = vpop.permute.xlu1 %799  ;;  %v1201_v57 = vsel %vm1041_vm12, %v1328_v40, 0.0 }
 0x227   :  { %v785_v42 = vpop.permute.xlu0 %784  ;;  %v1196_v33 = vadd.f32 %v1195_v46, %v1194_v3  ;;  %v2783_v46 = vld [vmem:[#allocation10_spill] sm:$0xff] }
 0x228   :  { %vm859_vm10 = vcmp.eq.s32.totalorder %v2183_v11, %v785_v42  ;;  %v2381_v50 = vsub.f32 %v2783_v46, %v2782_v35 }
 0x229   :  { %v891_v45 = vsel %vm859_vm10, %v2220_v37, 0.0  ;;  %v1470_v37 = vpop.eup %1469 }
 0x22a   :  { %653 = vadd.xlane.f32.xlu1 %v1464_v47  ;;  %929 = vadd.xlane.f32.xlu0 %v889_v12  ;;  %v892_v47 = vsel %vm860_vm6, %v2233_v21, 0.0  ;;  %v1198_v12 = vadd.f32 %v1197_v38, %v1196_v33  ;;  %v803_v30 = vpop.permute.xlu1 %802  ;;  %v1472_v21 = vpop.eup %1471  ;;  %vm862_vm6 = vcmp.eq.s32.totalorder %v2183_v11, %v794_v62 }
 0x22b   :  { %v791_v9 = vpop.permute.xlu0 %790  ;;  %v894_v62 = vsel %vm862_vm6, %v2257_v32, 0.0  ;;  %vm864_vm6 = vcmp.eq.s32.totalorder %v2183_v11, %v800_v6 }
 0x22c   :  { %vm861_vm10 = vcmp.eq.s32.totalorder %v2183_v11, %v791_v9  ;;  %v1200_v42 = vadd.f32 %v1199_v7, %v1198_v12  ;;  %v609_v9 = vmul.f32 1.442695, %v2381_v50  ;;  %v896_v40 = vsel %vm864_vm6, %v2281_v29, 0.0 }
 0x22d   :  { %v893_v36 = vsel %vm861_vm10, %v2244_v51, 0.0  ;;  %v1474_v51 = vpop.eup %1473 }
 0x22e   :  { %655 = vadd.xlane.f32.xlu1 %v1466_v43  ;;  %931 = vadd.xlane.f32.xlu0 %v890_v61  ;;  %v1329_v61 = vsel %vm2781_vm9, 1.0, %v2780_v15  ;;  %v806_v3 = vpop.permute.xlu1 %805  ;;  %v1202_v49 = vadd.f32 %v1201_v57, %v1200_v42  ;;  %v1476_v54 = vpop.eup %1475  ;;  %1483 = vpow2.f32 %v609_v9  ;;  %v2796_v9 = vld [vmem:[#allocation21_spill] sm:$0xff] }
 0x22f   :  { %v797_v43 = vpop.permute.xlu0 %796  ;;  %vm866_vm6 = vcmp.eq.s32.totalorder %v2183_v11, %v806_v3 }
 0x230   :  { %vm863_vm10 = vcmp.eq.s32.totalorder %v2183_v11, %v797_v43 }
 0x231   :  { %v895_v32 = vsel %vm863_vm10, %v2269_v26, 0.0  ;;  %v1478_v26 = vpop.eup %1477  ;;  %vm865_vm10 = vcmp.eq.s32.totalorder %v2183_v11, %v803_v30 }
 0x232   :  { %657 = vadd.xlane.f32.xlu1 %v1468_v60  ;;  %933 = vadd.xlane.f32.xlu0 %v891_v45  ;;  %v1203_v60 = vsel %vm1041_vm12, %v1329_v61, 0.0  ;;  %v2784_v45 = vld [vmem:[#allocation18_spill] sm:$0xff]  ;;  %v809_v12 = vpop.permute.xlu1 %808  ;;  %v1480_v43 = vpop.eup %1479  ;;  %v897_v61 = vsel %vm865_vm10, %v2292_v63, 0.0  ;;  %v898_v63 = vsel %vm866_vm6, %v2305_v13, 0.0 }
 0x233   :  { %vm2785_vm9 = vcmp.ne.s32.totalorder %v2784_v45, 4294967196  ;;  %v1204_v38 = vadd.f32 %v1203_v60, %v1202_v49  ;;  %v1482_v46 = vpop.eup %1481  ;;  %vm867_vm10 = vcmp.eq.s32.totalorder %v2183_v11, %v809_v12 }
 0x234   :  { %v1330_v33 = vsel %vm2785_vm9, 1.0, %v2780_v15  ;;  %vm2788_vm9 = vcmp.ne.s32.totalorder %v2787_v20, 4294967196 }
 0x235   :  { %v1331_v7 = vsel %vm2788_vm9, 1.0, %v2780_v15  ;;  %vm2791_vm9 = vcmp.ne.s32.totalorder %v2790_v56, 4294967196 }
 0x236   :  { %659 = vadd.xlane.f32.xlu1 %v1470_v37  ;;  %935 = vadd.xlane.f32.xlu0 %v892_v47  ;;  %v2392_v37 = vsub.f32 %v2786_v28, %v2207_v27  ;;  %v1205_v47 = vsel %vm1041_vm12, %v1330_v33, 0.0  ;;  %v2789_v27 = vld [vmem:[#allocation12_spill] sm:$0xff]  ;;  %v1207_v42 = vsel %vm1041_vm12, %v1331_v7, 0.0  ;;  %v1332_v57 = vsel %vm2791_vm9, 1.0, %v2780_v15  ;;  %v815_v29 = vpop.permute.xlu1 %814  ;;  %v2795_v33 = vld [vmem:[#allocation14_spill] sm:$0xff]  ;;  %v2798_v7 = vld [vmem:[#allocation15_spill] sm:$0xff] }
 0x237   :  { %v1206_v6 = vadd.f32 %v1205_v47, %v1204_v38  ;;  %vm2794_vm9 = vcmp.ne.s32.totalorder %v2793_v5, 4294967196  ;;  %v899_v47 = vsel %vm867_vm10, %v2314_v23, 0.0  ;;  %vm869_vm10 = vcmp.eq.s32.totalorder %v2183_v11, %v815_v29 }
 0x238   :  { %v1333_v35 = vsel %vm2794_vm9, 1.0, %v2780_v15  ;;  %vm2797_vm9 = vcmp.ne.s32.totalorder %v2796_v9, 4294967196  ;;  %v1484_v28 = vpop.eup %1483 }
 0x239   :  { %v1208_v30 = vadd.f32 %v1207_v42, %v1206_v6  ;;  %v1334_v13 = vsel %vm2797_vm9, 1.0, %v2780_v15  ;;  %v2799_v6 = vld [vmem:[#allocation22_spill] sm:$0xff] }
 0x23a   :  { %661 = vadd.xlane.f32.xlu1 %v1472_v21  ;;  %937 = vadd.xlane.f32.xlu0 %v893_v36  ;;  %v611_v21 = vmul.f32 1.442695, %v2392_v37  ;;  %v2403_v36 = vsub.f32 %v2789_v27, %v2213_v48  ;;  %v1209_v48 = vsel %vm1041_vm12, %v1332_v57, 0.0  ;;  %v818_v38 = vpop.permute.xlu1 %817  ;;  %vm2800_vm9 = vcmp.ne.s32.totalorder %v2799_v6, 4294967196 }
 0x23b   :  { %v1210_v60 = vadd.f32 %v1209_v48, %v1208_v30 }
 0x23c   :  { %1485 = vpow2.f32 %v611_v21  ;;  %v1335_v21 = vsel %vm2800_vm9, 1.0, %v2780_v15 }
 0x23d   :  { %v1215_v30 = vsel %vm1041_vm12, %v1335_v21, 0.0  ;;  %v2809_v21 = vld [vmem:[#allocation28_spill] sm:$0xff] }
 0x23e   :  { %663 = vadd.xlane.f32.xlu1 %v1474_v51  ;;  %939 = vadd.xlane.f32.xlu0 %v894_v62  ;;  %v613_v51 = vmul.f32 1.442695, %v2403_v36  ;;  %v2792_v62 = vld [vmem:[#allocation13_spill] sm:$0xff]  ;;  %v821_v23 = vpop.permute.xlu1 %820 }
 0x23f   :  { %v2415_v49 = vsub.f32 %v2792_v62, %v2224_v53  ;;  %v1211_v53 = vsel %vm1041_vm12, %v1333_v35, 0.0 }
 0x240   :  { %1487 = vpow2.f32 %v613_v51  ;;  %v1212_v12 = vadd.f32 %v1211_v53, %v1210_v60  ;;  %v2802_v51 = vld [vmem:[#allocation25_spill] sm:$0xff] }
 0x241   :  { %v615_v3 = vmul.f32 1.442695, %v2415_v49  ;;  %vm2803_vm9 = vcmp.ne.s32.totalorder %v2802_v51, 4294967196 }
 0x242   :  { %665 = vadd.xlane.f32.xlu1 %v1476_v54  ;;  %941 = vadd.xlane.f32.xlu0 %v895_v32  ;;  %v2425_v54 = vsub.f32 %v2795_v33, %v2222_v4  ;;  %v812_v32 = vpop.permute.xlu0 %811  ;;  %v1336_v48 = vsel %vm2803_vm9, 1.0, %v2780_v15  ;;  %v824_v60 = vpop.permute.xlu1 %823 }
 0x243   :  { %vm868_vm6 = vcmp.eq.s32.totalorder %v2183_v11, %v812_v32  ;;  %1489 = vpow2.f32 %v615_v3  ;;  %v2805_v3 = vld [vmem:[#allocation24_spill] sm:$0xff] }
 0x244   :  { %v617_v4 = vmul.f32 1.442695, %v2425_v54  ;;  %v900_v42 = vsel %vm868_vm6, %v2326_v59, 0.0  ;;  %v901_v59 = vsel %vm869_vm10, %v2337_v34, 0.0  ;;  %vm870_vm6 = vcmp.eq.s32.totalorder %v2183_v11, %v818_v38 }
 0x245   :  { %vm2806_vm9 = vcmp.ne.s32.totalorder %v2805_v3, 4294967196  ;;  %v902_v53 = vsel %vm870_vm6, %v2348_v0, 0.0  ;;  %vm871_vm10 = vcmp.eq.s32.totalorder %v2183_v11, %v821_v23  ;;  %vm872_vm6 = vcmp.eq.s32.totalorder %v2183_v11, %v824_v60 }
 0x246   :  { %667 = vadd.xlane.f32.xlu1 %v1478_v26  ;;  %943 = vadd.xlane.f32.xlu0 %v896_v40  ;;  %v2436_v26 = vsub.f32 %v2798_v7, %v2235_v22  ;;  %v1213_v40 = vsel %vm1041_vm12, %v1334_v13, 0.0  ;;  %v1486_v27 = vpop.eup %1485  ;;  %1491 = vpow2.f32 %v617_v4  ;;  %v2801_v22 = vld [vmem:[#allocation16_spill] sm:$0xff]  ;;  %v1337_v33 = vsel %vm2806_vm9, 1.0, %v2780_v15  ;;  %v2807_v13 = vld [vmem:[#allocation26_spill] sm:$0xff]  ;;  %v827_v7 = vpop.permute.xlu1 %826 }
 0x247   :  { %v1214_v57 = vadd.f32 %v1213_v40, %v1212_v12  ;;  %vm2808_vm15 = vcmp.ne.s32.totalorder %v2807_v13, 4294967196  ;;  %v830_v12 = vpop.permute.xlu0 %829  ;;  %v903_v4 = vsel %vm871_vm10, %v2358_v39, 0.0  ;;  %vm2810_vm9 = vcmp.ne.s32.totalorder %v2809_v21, 4294967196 }
 0x249   :  { %v1216_v35 = vadd.f32 %v1215_v30, %v1214_v57  ;;  %v2811_v30 = vld [vmem:[#allocation30_spill] sm:$0xff] }
 0x24a   :  { %669 = vadd.xlane.f32.xlu1 %v1480_v43  ;;  %945 = vadd.xlane.f32.xlu0 %v897_v61  ;;  %v619_v43 = vmul.f32 1.442695, %v2436_v26  ;;  %v2447_v61 = vsub.f32 %v2801_v22, %v2229_v44  ;;  %v1488_v62 = vpop.eup %1487  ;;  %v2804_v44 = vld [vmem:[#allocation17_spill] sm:$0xff]  ;;  %v833_v22 = vpop.permute.xlu1 %832  ;;  %vm2812_vm10 = vcmp.ne.s32.totalorder %v2811_v30, 4294967196 }
 0x24c   :  { %1493 = vpow2.f32 %v619_v43  ;;  %v621_v29 = vmul.f32 1.442695, %v2447_v61  ;;  %v836_v43 = vpop.permute.xlu0 %835 }
 0x24d   :  { %v1490_v34 = vpop.eup %1489 }
 0x24e   :  { %671 = vadd.xlane.f32.xlu1 %v1482_v46  ;;  %947 = vadd.xlane.f32.xlu0 %v898_v63  ;;  %v2458_v46 = vsub.f32 %v2804_v44, %v2251_v31  ;;  %v1217_v63 = vsel %vm1041_vm12, %v1336_v48, 0.0  ;;  %1495 = vpow2.f32 %v621_v29  ;;  %v1219_v31 = vsel %vm1041_vm12, %v1337_v33, 0.0  ;;  %v2813_v29 = vld [vmem:[#allocation32_spill] sm:$0xff] }
 0x24f   :  { %v1218_v32 = vadd.f32 %v1217_v63, %v1216_v35  ;;  %v1340_v48 = vsel %vm2812_vm10, 1.0, %v2780_v15  ;;  %v1341_v44 = vsel %vm2748_vm0, 1.0, %v2780_v15 }
 0x250   :  { %v623_v38 = vmul.f32 1.442695, %v2458_v46  ;;  %v839_v33 = vpop.permute.xlu0 %838 }
 0x251   :  { %v1220_v0 = vadd.f32 %v1219_v31, %v1218_v32  ;;  %v2814_v32 = vld [vmem:[#allocation27_spill] sm:$0xff] }
 0x252   :  { %673 = vadd.xlane.f32.xlu1 %v1484_v28  ;;  %949 = vadd.xlane.f32.xlu0 %v899_v47  ;;  %v1338_v28 = vsel %vm2808_vm15, 1.0, %v2780_v15  ;;  %v1492_v47 = vpop.eup %1491  ;;  %1497 = vpow2.f32 %v623_v38  ;;  %vm873_vm15 = vcmp.eq.s32.totalorder %v2183_v11, %v827_v7  ;;  %vm2815_vm10 = vcmp.ne.s32.totalorder %v2814_v32, 4294967196 }
 0x253   :  { %v1221_v40 = vsel %vm1041_vm12, %v1338_v28, 0.0  ;;  %v1342_v38 = vsel %vm2815_vm10, 1.0, %v2780_v15  ;;  %1499 = vlog2.f32 %v2284_v2 }
 0x254   :  { %v1222_v57 = vadd.f32 %v1221_v40, %v1220_v0  ;;  %v1343_v0 = vsel %vm425_vm14, 1.0, %v2780_v15 }
 0x256   :  { %675 = vadd.xlane.f32.xlu1 %v1486_v27  ;;  %951 = vadd.xlane.f32.xlu0 %v900_v42  ;;  %v1339_v27 = vsel %vm2810_vm9, 1.0, %v2780_v15  ;;  %v1494_v23 = vpop.eup %1493  ;;  %v904_v42 = vsel %vm872_vm6, %v2370_v52, 0.0  ;;  %vm874_vm9 = vcmp.eq.s32.totalorder %v2183_v11, %v830_v12  ;;  %v1225_v52 = vsel %vm1041_vm12, %v1340_v48, 0.0  ;;  %v848_v12 = vpop.permute.xlu0 %847  ;;  %v2821_v48 = vld [vmem:[#allocation35_spill] sm:$0xff] }
 0x257   :  { %v1223_v39 = vsel %vm1041_vm12, %v1339_v27, 0.0  ;;  %v906_v60 = vsel %vm874_vm9, %v2392_v37, 0.0  ;;  %vm876_vm6 = vcmp.eq.s32.totalorder %v2183_v11, %v836_v43  ;;  %vm877_vm9 = vcmp.eq.s32.totalorder %v2183_v11, %v839_v33  ;;  %v2819_v43 = vld [vmem:[#allocation31_spill] sm:$0xff] }
 0x258   :  { %v1224_v35 = vadd.f32 %v1223_v39, %v1222_v57  ;;  %v908_v31 = vsel %vm876_vm6, %v2415_v49, 0.0  ;;  %v909_v40 = vsel %vm877_vm9, %v2425_v54, 0.0  ;;  %vm880_vm6 = vcmp.eq.s32.totalorder %v2183_v11, %v848_v12 }
 0x259   :  { %v1231_v27 = vsel %vm1041_vm12, %v1343_v0, 0.0  ;;  %v912_v57 = vsel %vm880_vm6, %v2458_v46, 0.0  ;;  %vm2822_vm9 = vcmp.ne.s32.totalorder %v2821_v48, 4294967196 }
 0x25a   :  { %677 = vadd.xlane.f32.xlu1 %v1488_v62  ;;  %953 = vadd.xlane.f32.xlu0 %v901_v59  ;;  %v1496_v62 = vpop.eup %1495  ;;  %v905_v59 = vsel %vm873_vm15, %v2381_v50, 0.0  ;;  %vm875_vm15 = vcmp.eq.s32.totalorder %v2183_v11, %v833_v22  ;;  %v1227_v50 = vsel %vm1041_vm12, %v1341_v44, 0.0 }
 0x25b   :  { %v907_v28 = vsel %vm875_vm15, %v2403_v36, 0.0 }
 0x25c   :  { %v1498_v63 = vpop.eup %1497 }
 0x25e   :  { %679 = vadd.xlane.f32.xlu1 %v1490_v34  ;;  %955 = vadd.xlane.f32.xlu0 %v902_v53  ;;  %v842_v34 = vpop.permute.xlu1 %841  ;;  %v1226_v53 = vadd.f32 %v1225_v52, %v1224_v35 }
 0x25f   :  { %vm878_vm0 = vcmp.eq.s32.totalorder %v2183_v11, %v842_v34  ;;  %v2825_v34 = vld [vmem:[#allocation33_spill] sm:$0xff] }
 0x260   :  { %v1228_v37 = vadd.f32 %v1227_v50, %v1226_v53  ;;  %v910_v49 = vsel %vm878_vm0, %v2436_v26, 0.0  ;;  %vm2820_vm0 = vcmp.ne.s32.totalorder %v2819_v43, 4294967196 }
 0x262   :  { %681 = vadd.xlane.f32.xlu1 %v1492_v47  ;;  %957 = vadd.xlane.f32.xlu0 %v903_v4  ;;  %v1229_v47 = vsel %vm1041_vm12, %v1342_v38, 0.0  ;;  %v845_v4 = vpop.permute.xlu1 %844 }
 0x263   :  { %v1230_v36 = vadd.f32 %v1229_v47, %v1228_v37  ;;  %vm879_vm15 = vcmp.eq.s32.totalorder %v2183_v11, %v845_v4  ;;  %v1345_v11 = vsel %vm2820_vm0, 1.0, %v2780_v15  ;;  %v1500_v4 = vpop.eup %1499  ;;  %vm2840_vm0 = vcmp.ne.s32.totalorder %v2802_v51, 4294967196 }
 0x264   :  { %v911_v39 = vsel %vm879_vm15, %v2447_v61, 0.0  ;;  %v2823_v61 = vld [vmem:[#allocation36_spill] sm:$0xff]  ;;  %vm2826_vm15 = vcmp.ne.s32.totalorder %v2825_v34, 4294967196 }
 0x265   :  { %v1232_v54 = vadd.f32 %v1231_v27, %v1230_v36  ;;  %vm2824_vm6 = vcmp.ne.s32.totalorder %v2823_v61, 4294967196  ;;  %v1348_v53 = vsel %vm2826_vm15, 1.0, %v2780_v15  ;;  %vm2843_vm15 = vcmp.ne.s32.totalorder %v2809_v21, 4294967196 }
 0x266   :  { %683 = vadd.xlane.f32.xlu1 %v1494_v23  ;;  %959 = vadd.xlane.f32.xlu0 %v904_v42  ;;  %v2817_v23 = vld [vmem:[#allocation29_spill] sm:$0xff]  ;;  %v1347_v52 = vsel %vm2824_vm6, 1.0, %v2780_v15  ;;  %vm2842_vm6 = vcmp.ne.s32.totalorder %v2807_v13, 4294967196 }
 0x267   :  { %vm2818_vm10 = vcmp.ne.s32.totalorder %v2817_v23, 4294967196  ;;  %v1239_v33 = vsel %vm1041_vm12, %v1347_v52, 0.0 }
 0x268   :  { %v1344_v42 = vsel %vm2818_vm10, 1.0, %v2780_v15  ;;  %vm2839_vm10 = vcmp.ne.s32.totalorder %v2799_v6, 4294967196 }
 0x269   :  { %v1233_v26 = vsel %vm1041_vm12, %v1344_v42, 0.0 }
 0x26a   :  { %685 = vadd.xlane.f32.xlu1 %v1496_v62  ;;  %961 = vadd.xlane.f32.xlu0 %v905_v59  ;;  %v1234_v22 = vadd.f32 %v1233_v26, %v1232_v54  ;;  %v1346_v62 = vsel %vm2822_vm9, 1.0, %v2780_v15  ;;  %v1235_v59 = vsel %vm1041_vm12, %v1345_v11, 0.0  ;;  %vm2841_vm9 = vcmp.ne.s32.totalorder %v2805_v3, 4294967196 }
 0x26b   :  { %v1237_v46 = vsel %vm1041_vm12, %v1346_v62, 0.0 }
 0x26c   :  { %v1236_v44 = vadd.f32 %v1235_v59, %v1234_v22 }
 0x26e   :  { %687 = vadd.xlane.f32.xlu1 %v1498_v63  ;;  %963 = vadd.xlane.f32.xlu0 %v906_v60  ;;  %v1238_v60 = vadd.f32 %v1237_v46, %v1236_v44 }
 0x270   :  { %v1240_v50 = vadd.f32 %v1239_v33, %v1238_v60  ;;  %v914_v2 = vpop.xlane.xlu0 %913 }
 0x272   :  { %965 = vadd.xlane.f32.xlu1 %v907_v28  ;;  %967 = vadd.xlane.f32.xlu0 %v908_v31  ;;  %v1241_v31 = vsel %vm1041_vm12, %v1348_v53, 0.0  ;;  %v2827_v28 = vld [vmem:[#allocation38_spill] sm:$0xff] }
 0x273   :  { %1501 = vlog2.f32 %v2827_v28  ;;  %v1242_v37 = vadd.f32 %v1241_v31, %v1240_v50 }
 0x274   :  { %1503 = vlog2.f32 %v2260_v41 }
 0x275   :  { %1505 = vlog2.f32 %v2265_v24 }
 0x276   :  { %971 = vadd.xlane.f32.xlu0 %v910_v49  ;;  %969 = vadd.xlane.f32.xlu1 %v909_v40  ;;  %v692_v49 = vmul.f32 0.6931472, %v1500_v4 }
 0x27a   :  { %973 = vadd.xlane.f32.xlu1 %v911_v39  ;;  %975 = vadd.xlane.f32.xlu0 %v912_v57 }
 0x27d   :  { %v1502_v0 = vpop.eup %1501 }
 0x27e   :  { %1243 = vadd.xlane.f32.xlu0 %v1242_v37  ;;  %v1504_v40 = vpop.eup %1503  ;;  %v694_v42 = vmul.f32 0.6931472, %v1502_v0  ;;  %v924_v0 = vpop.xlane.xlu0 %923 }
 0x27f   :  { %v634_v35 = vpop.xlane.xlu1 %633  ;;  %v690_v36 = vmul.f32 0.6931472, %v1504_v40  ;;  %v1506_v11 = vpop.eup %1505 }
 0x280   :  { %v696_v52 = vmul.f32 0.6931472, %v1506_v11 }
 0x281   :  { %v977_v39 = vsub.f32 %v690_v36, %v914_v2 }
 0x283   :  { %v636_v63 = vpop.xlane.xlu1 %635  ;;  %v1009_v62 = vsel %vm399_vm3, %v977_v39, 0.0  ;;  %vm2832_vm3 = vcmp.ne.s32.totalorder %v1954_v17, 4294967196 }
 0x284   :  { %1507 = vlog2.f32 %v636_v63  ;;  %v1042_v63 = vsel %vm1041_vm12, %v1009_v62, 0.0 }
 0x285   :  { %1509 = vlog2.f32 %v634_v35 }
 0x287   :  { %v638_v38 = vpop.xlane.xlu1 %637 }
 0x288   :  { %1511 = vlog2.f32 %v638_v38 }
 0x28b   :  { %v640_v47 = vpop.xlane.xlu1 %639 }
 0x28c   :  { %1513 = vlog2.f32 %v640_v47 }
 0x28e   :  { %v1508_v44 = vpop.eup %1507 }
 0x28f   :  { %v916_v12 = vpop.xlane.xlu1 %915  ;;  %v700_v50 = vmul.f32 0.6931472, %v1508_v44  ;;  %v1510_v37 = vpop.eup %1509 }
 0x290   :  { %v978_v27 = vsub.f32 %v692_v49, %v916_v12  ;;  %v698_v49 = vmul.f32 0.6931472, %v1510_v37 }
 0x291   :  { %v982_v40 = vsub.f32 %v700_v50, %v924_v0 }
 0x292   :  { %v1010_v26 = vsel %vm400_vm1, %v978_v27, 0.0  ;;  %vm2830_vm1 = vcmp.ne.s32.totalorder %v1745_v25, 4294967196 }
 0x293   :  { %v2535_v15 = vpop.xlane.xlu1 %641  ;;  %v1043_v46 = vsel %vm1041_vm12, %v1010_v26, 0.0  ;;  %v1014_v27 = vsel %vm404_vm5, %v982_v40, 0.0  ;;  %vm2834_vm5 = vcmp.ne.s32.totalorder %v2784_v45, 4294967196 }
 0x294   :  { %v1044_v33 = vadd.f32 %v1043_v46, %v1042_v63  ;;  %1515 = vlog2.f32 %v2535_v15 }
 0x297   :  { %v918_v57 = vpop.xlane.xlu1 %917 }
 0x298   :  { %v979_v54 = vsub.f32 %v694_v42, %v918_v57  ;;  %v1512_v42 = vpop.eup %1511 }
 0x299   :  { %v702_v41 = vmul.f32 0.6931472, %v1512_v42  ;;  %v1514_v47 = vpop.eup %1513 }
 0x29a   :  { %v1011_v59 = vsel %vm401_vm4, %v979_v54, 0.0  ;;  %v1051_v54 = vsel %vm1041_vm12, %v1014_v27, 0.0  ;;  %vm2833_vm4 = vcmp.ne.s32.totalorder %v2022_v19, 4294967196 }
 0x29b   :  { %v644_v22 = vpop.xlane.xlu1 %643  ;;  %v1045_v60 = vsel %vm1041_vm12, %v1011_v59, 0.0  ;;  %v704_v59 = vmul.f32 0.6931472, %v1514_v47 }
 0x29c   :  { %v1046_v31 = vadd.f32 %v1045_v60, %v1044_v33  ;;  %1517 = vlog2.f32 %v644_v22 }
 0x29f   :  { %v920_v35 = vpop.xlane.xlu1 %919 }
 0x2a0   :  { %v980_v53 = vsub.f32 %v696_v52, %v920_v35 }
 0x2a2   :  { %v1012_v28 = vsel %vm402_vm2, %v980_v53, 0.0  ;;  %vm2831_vm2 = vcmp.ne.s32.totalorder %v2004_v8, 4294967196 }
 0x2a3   :  { %v1047_v16 = vsel %vm1041_vm12, %v1012_v28, 0.0  ;;  %v646_v12 = vpop.xlane.xlu1 %645 }
 0x2a4   :  { %v1048_v4 = vadd.f32 %v1047_v16, %v1046_v31  ;;  %1519 = vlog2.f32 %v646_v12 }
 0x2a7   :  { %v922_v2 = vpop.xlane.xlu1 %921 }
 0x2a8   :  { %v981_v36 = vsub.f32 %v698_v49, %v922_v2  ;;  %v1516_v2 = vpop.eup %1515 }
 0x2a9   :  { %v706_v42 = vmul.f32 0.6931472, %v1516_v2 }
 0x2aa   :  { %v1013_v38 = vsel %vm2830_vm1, %v981_v36, 0.0  ;;  %vm2844_vm1 = vcmp.ne.s32.totalorder %v2811_v30, 4294967196 }
 0x2ab   :  { %v1049_v14 = vsel %vm1041_vm12, %v1013_v38, 0.0  ;;  %v648_v57 = vpop.xlane.xlu1 %647  ;;  %v1518_v38 = vpop.eup %1517 }
 0x2ac   :  { %v1050_v39 = vadd.f32 %v1049_v14, %v1048_v4  ;;  %1521 = vlog2.f32 %v648_v57  ;;  %v708_v22 = vmul.f32 0.6931472, %v1518_v38 }
 0x2ae   :  { %v1052_v26 = vadd.f32 %v1051_v54, %v1050_v39  ;;  %v1520_v14 = vpop.eup %1519 }
 0x2af   :  { %v650_v11 = vpop.xlane.xlu1 %649  ;;  %v926_v24 = vpop.xlane.xlu0 %925  ;;  %v710_v12 = vmul.f32 0.6931472, %v1520_v14 }
 0x2b0   :  { %v983_v62 = vsub.f32 %v702_v41, %v926_v24  ;;  %1523 = vlog2.f32 %v650_v11 }
 0x2b2   :  { %v1015_v18 = vsel %vm405_vm11, %v983_v62, 0.0  ;;  %vm2837_vm11 = vcmp.ne.s32.totalorder %v2793_v5, 4294967196 }
 0x2b3   :  { %v1053_v25 = vsel %vm1041_vm12, %v1015_v18, 0.0  ;;  %v652_v46 = vpop.xlane.xlu1 %651  ;;  %v928_v52 = vpop.xlane.xlu0 %927 }
 0x2b4   :  { %v1054_v44 = vadd.f32 %v1053_v25, %v1052_v26  ;;  %v984_v63 = vsub.f32 %v704_v59, %v928_v52  ;;  %1525 = vlog2.f32 %v652_v46 }
 0x2b6   :  { %v1016_v60 = vsel %vm406_vm7, %v984_v63, 0.0  ;;  %v1522_v41 = vpop.eup %1521  ;;  %vm2835_vm7 = vcmp.ne.s32.totalorder %v2787_v20, 4294967196 }
 0x2b7   :  { %v1055_v35 = vsel %vm1041_vm12, %v1016_v60, 0.0  ;;  %v654_v33 = vpop.xlane.xlu1 %653  ;;  %v930_v53 = vpop.xlane.xlu0 %929  ;;  %v712_v18 = vmul.f32 0.6931472, %v1522_v41 }
 0x2b8   :  { %v1056_v50 = vadd.f32 %v1055_v35, %v1054_v44  ;;  %1527 = vlog2.f32 %v654_v33  ;;  %v985_v39 = vsub.f32 %v706_v42, %v930_v53 }
 0x2ba   :  { %v1017_v57 = vsel %vm407_vm13, %v985_v39, 0.0  ;;  %v1524_v62 = vpop.eup %1523  ;;  %vm2838_vm13 = vcmp.ne.s32.totalorder %v2796_v9, 4294967196 }
 0x2bb   :  { %v656_v31 = vpop.xlane.xlu1 %655  ;;  %v932_v28 = vpop.xlane.xlu0 %931  ;;  %v1057_v25 = vsel %vm1041_vm12, %v1017_v57, 0.0  ;;  %v714_v63 = vmul.f32 0.6931472, %v1524_v62 }
 0x2bc   :  { %1529 = vlog2.f32 %v656_v31  ;;  %v986_v26 = vsub.f32 %v708_v22, %v932_v28 }
 0x2be   :  { %v1526_v59 = vpop.eup %1525  ;;  %v1018_v46 = vsel %vm408_vm8, %v986_v26, 0.0  ;;  %vm2836_vm8 = vcmp.ne.s32.totalorder %v2790_v56, 4294967196 }
 0x2bf   :  { %v658_v37 = vpop.xlane.xlu1 %657  ;;  %v934_v58 = vpop.xlane.xlu0 %933  ;;  %v1059_v33 = vsel %vm1041_vm12, %v1018_v46, 0.0  ;;  %v716_v31 = vmul.f32 0.6931472, %v1526_v59 }
 0x2c0   :  { %1531 = vlog2.f32 %v658_v37  ;;  %v987_v47 = vsub.f32 %v710_v12, %v934_v58  ;;  %v1058_v37 = vadd.f32 %v1057_v25, %v1056_v50 }
 0x2c2   :  { %v1019_v52 = vsel %vm2831_vm2, %v987_v47, 0.0  ;;  %v1528_v35 = vpop.eup %1527  ;;  %v1060_v38 = vadd.f32 %v1059_v33, %v1058_v37  ;;  %vm2845_vm2 = vcmp.ne.s32.totalorder %v2813_v29, 4294967196 }
 0x2c3   :  { %v660_v16 = vpop.xlane.xlu1 %659  ;;  %v936_v4 = vpop.xlane.xlu0 %935  ;;  %v1061_v58 = vsel %vm1041_vm12, %v1019_v52, 0.0 }
 0x2c4   :  { %1533 = vlog2.f32 %v660_v16  ;;  %v988_v44 = vsub.f32 %v712_v18, %v936_v4  ;;  %v718_v16 = vmul.f32 0.6931472, %v1528_v35  ;;  %v1062_v50 = vadd.f32 %v1061_v58, %v1060_v38 }
 0x2c6   :  { %v1530_v28 = vpop.eup %1529  ;;  %v1020_v55 = vsel %vm2832_vm3, %v988_v44, 0.0  ;;  %vm2846_vm3 = vcmp.ne.s32.totalorder %v2814_v32, 4294967196 }
 0x2c7   :  { %v662_v0 = vpop.xlane.xlu1 %661  ;;  %v938_v40 = vpop.xlane.xlu0 %937  ;;  %v1063_v14 = vsel %vm1041_vm12, %v1020_v55, 0.0 }
 0x2c8   :  { %1535 = vlog2.f32 %v662_v0  ;;  %v989_v53 = vsub.f32 %v714_v63, %v938_v40  ;;  %v1064_v26 = vadd.f32 %v1063_v14, %v1062_v50 }
 0x2ca   :  { %v1532_v2 = vpop.eup %1531  ;;  %v1021_v42 = vsel %vm2833_vm4, %v989_v53, 0.0  ;;  %vm2847_vm4 = vcmp.ne.s32.totalorder %v2817_v23, 4294967196 }
 0x2cb   :  { %v664_v49 = vpop.xlane.xlu1 %663  ;;  %v940_v10 = vpop.xlane.xlu0 %939  ;;  %v1065_v19 = vsel %vm1041_vm12, %v1021_v42, 0.0 }
 0x2cc   :  { %1537 = vlog2.f32 %v664_v49  ;;  %v990_v8 = vsub.f32 %v716_v31, %v940_v10  ;;  %v720_v49 = vmul.f32 0.6931472, %v1530_v28  ;;  %v1066_v62 = vadd.f32 %v1065_v19, %v1064_v26 }
 0x2ce   :  { %v1534_v39 = vpop.eup %1533  ;;  %v1022_v17 = vsel %vm2834_vm5, %v990_v8, 0.0  ;;  %vm2848_vm5 = vcmp.ne.s32.totalorder %v2819_v43, 4294967196 }
 0x2cf   :  { %v666_v36 = vpop.xlane.xlu1 %665  ;;  %v2562_v27 = vpop.xlane.xlu0 %941  ;;  %v1067_v57 = vsel %vm1041_vm12, %v1022_v17, 0.0  ;;  %v724_v47 = vmul.f32 0.6931472, %v1534_v39 }
 0x2d0   :  { %1539 = vlog2.f32 %v666_v36  ;;  %v991_v40 = vsub.f32 %v718_v16, %v2562_v27  ;;  %v722_v36 = vmul.f32 0.6931472, %v1532_v2  ;;  %v1068_v44 = vadd.f32 %v1067_v57, %v1066_v62 }
 0x2d2   :  { %v1536_v41 = vpop.eup %1535  ;;  %v1023_v27 = vsel %vm2835_vm7, %v991_v40, 0.0  ;;  %vm2850_vm7 = vcmp.ne.s32.totalorder %v2823_v61, 4294967196 }
 0x2d3   :  { %v668_v54 = vpop.xlane.xlu1 %667  ;;  %v2564_v15 = vpop.xlane.xlu0 %943  ;;  %v1069_v59 = vsel %vm1041_vm12, %v1023_v27, 0.0  ;;  %v726_v46 = vmul.f32 0.6931472, %v1536_v41 }
 0x2d4   :  { %1541 = vlog2.f32 %v668_v54  ;;  %v992_v10 = vsub.f32 %v720_v49, %v2564_v15  ;;  %v1070_v33 = vadd.f32 %v1069_v59, %v1068_v44 }
 0x2d6   :  { %v1538_v45 = vpop.eup %1537  ;;  %v1024_v15 = vsel %vm2836_vm8, %v992_v10, 0.0  ;;  %vm2851_vm8 = vcmp.ne.s32.totalorder %v2825_v34, 4294967196 }
 0x2d7   :  { %v670_v11 = vpop.xlane.xlu1 %669  ;;  %v946_v24 = vpop.xlane.xlu0 %945 }
 0x2d8   :  { %1543 = vlog2.f32 %v670_v11  ;;  %v993_v54 = vsub.f32 %v722_v36, %v946_v24  ;;  %v1071_v24 = vsel %vm1041_vm12, %v1024_v15, 0.0 }
 0x2d9   :  { %v1072_v55 = vadd.f32 %v1071_v24, %v1070_v33 }
 0x2da   :  { %v1540_v52 = vpop.eup %1539  ;;  %v1025_v20 = vsel %vm2837_vm11, %v993_v54, 0.0 }
 0x2db   :  { %v672_v1 = vpop.xlane.xlu1 %671  ;;  %v948_v60 = vpop.xlane.xlu0 %947  ;;  %v1073_v31 = vsel %vm1041_vm12, %v1025_v20, 0.0  ;;  %v730_v37 = vmul.f32 0.6931472, %v1540_v52 }
 0x2dc   :  { %1545 = vlog2.f32 %v672_v1  ;;  %v994_v25 = vsub.f32 %v724_v47, %v948_v60  ;;  %v728_v1 = vmul.f32 0.6931472, %v1538_v45 }
 0x2de   :  { %v1542_v35 = vpop.eup %1541  ;;  %v1026_v60 = vsel %vm2838_vm13, %v994_v25, 0.0 }
 0x2df   :  { %v674_v4 = vpop.xlane.xlu1 %673  ;;  %v950_v0 = vpop.xlane.xlu0 %949  ;;  %v732_v16 = vmul.f32 0.6931472, %v1542_v35  ;;  %v1075_v2 = vsel %vm1041_vm12, %v1026_v60, 0.0 }
 0x2e0   :  { %1547 = vlog2.f32 %v674_v4  ;;  %v995_v63 = vsub.f32 %v726_v46, %v950_v0  ;;  %v1074_v0 = vadd.f32 %v1073_v31, %v1072_v55 }
 0x2e2   :  { %v1544_v58 = vpop.eup %1543  ;;  %v1027_v5 = vsel %vm2839_vm10, %v995_v63, 0.0  ;;  %v1076_v14 = vadd.f32 %v1075_v2, %v1074_v0 }
 0x2e3   :  { %v676_v22 = vpop.xlane.xlu1 %675  ;;  %v952_v12 = vpop.xlane.xlu0 %951  ;;  %v734_v49 = vmul.f32 0.6931472, %v1544_v58  ;;  %v1077_v50 = vsel %vm1041_vm12, %v1027_v5, 0.0 }
 0x2e4   :  { %v996_v28 = vsub.f32 %v728_v1, %v952_v12  ;;  %1549 = vlog2.f32 %v676_v22  ;;  %v1078_v19 = vadd.f32 %v1077_v50, %v1076_v14 }
 0x2e6   :  { %v1546_v4 = vpop.eup %1545  ;;  %v1028_v9 = vsel %vm2840_vm0, %v996_v28, 0.0 }
 0x2e7   :  { %v678_v11 = vpop.xlane.xlu1 %677  ;;  %v954_v18 = vpop.xlane.xlu0 %953  ;;  %v736_v17 = vmul.f32 0.6931472, %v1546_v4  ;;  %v1079_v36 = vsel %vm1041_vm12, %v1028_v9, 0.0 }
 0x2e8   :  { %v997_v8 = vsub.f32 %v730_v37, %v954_v18  ;;  %1551 = vlog2.f32 %v678_v11  ;;  %v1080_v27 = vadd.f32 %v1079_v36, %v1078_v19 }
 0x2ea   :  { %v1029_v6 = vsel %vm2841_vm9, %v997_v8, 0.0  ;;  %v1548_v10 = vpop.eup %1547 }
 0x2eb   :  { %v680_v56 = vpop.xlane.xlu1 %679  ;;  %v956_v53 = vpop.xlane.xlu0 %955  ;;  %v1081_v26 = vsel %vm1041_vm12, %v1029_v6, 0.0  ;;  %v738_v54 = vmul.f32 0.6931472, %v1548_v10 }
 0x2ec   :  { %v998_v40 = vsub.f32 %v732_v16, %v956_v53  ;;  %1553 = vlog2.f32 %v680_v56  ;;  %v1082_v15 = vadd.f32 %v1081_v26, %v1080_v27 }
 0x2ee   :  { %v1030_v51 = vsel %vm2842_vm6, %v998_v40, 0.0  ;;  %v1550_v57 = vpop.eup %1549 }
 0x2ef   :  { %v682_v38 = vpop.xlane.xlu1 %681  ;;  %v958_v42 = vpop.xlane.xlu0 %957  ;;  %v1083_v47 = vsel %vm1041_vm12, %v1030_v51, 0.0  ;;  %v740_v46 = vmul.f32 0.6931472, %v1550_v57 }
 0x2f0   :  { %v999_v39 = vsub.f32 %v734_v49, %v958_v42  ;;  %1555 = vlog2.f32 %v682_v38  ;;  %v1084_v25 = vadd.f32 %v1083_v47, %v1082_v15 }
 0x2f2   :  { %v1031_v3 = vsel %vm2843_vm15, %v999_v39, 0.0  ;;  %v1552_v59 = vpop.eup %1551 }
 0x2f3   :  { %v684_v22 = vpop.xlane.xlu1 %683  ;;  %v960_v12 = vpop.xlane.xlu0 %959  ;;  %v1085_v18 = vsel %vm1041_vm12, %v1031_v3, 0.0  ;;  %v742_v53 = vmul.f32 0.6931472, %v1552_v59 }
 0x2f4   :  { %v1000_v41 = vsub.f32 %v736_v17, %v960_v12  ;;  %1557 = vlog2.f32 %v684_v22  ;;  %v1086_v63 = vadd.f32 %v1085_v18, %v1084_v25 }
 0x2f6   :  { %v1032_v13 = vsel %vm2844_vm1, %v1000_v41, 0.0  ;;  %v1554_v52 = vpop.eup %1553 }
 0x2f7   :  { %v686_v45 = vpop.xlane.xlu1 %685  ;;  %v962_v62 = vpop.xlane.xlu0 %961  ;;  %v1087_v44 = vsel %vm1041_vm12, %v1032_v13, 0.0  ;;  %v744_v31 = vmul.f32 0.6931472, %v1554_v52 }
 0x2f8   :  { %v1001_v11 = vsub.f32 %v738_v54, %v962_v62  ;;  %1559 = vlog2.f32 %v686_v45  ;;  %v1088_v33 = vadd.f32 %v1087_v44, %v1086_v63 }
 0x2fa   :  { %v1033_v21 = vsel %vm2845_vm2, %v1001_v11, 0.0  ;;  %v1556_v35 = vpop.eup %1555 }
 0x2fb   :  { %v688_v20 = vpop.xlane.xlu1 %687  ;;  %v964_v24 = vpop.xlane.xlu0 %963  ;;  %v1089_v30 = vsel %vm1041_vm12, %v1033_v21, 0.0  ;;  %v746_v8 = vmul.f32 0.6931472, %v1556_v35 }
 0x2fc   :  { %1561 = vlog2.f32 %v688_v20  ;;  %v1002_v1 = vsub.f32 %v740_v46, %v964_v24  ;;  %v1090_v58 = vadd.f32 %v1089_v30, %v1088_v33 }
 0x2fe   :  { %v1034_v56 = vsel %vm2846_vm3, %v1002_v1, 0.0  ;;  %v1558_v29 = vpop.eup %1557 }
 0x2ff   :  { %v1091_v60 = vsel %vm1041_vm12, %v1034_v56, 0.0  ;;  %v966_v28 = vpop.xlane.xlu1 %965  ;;  %v968_v37 = vpop.xlane.xlu0 %967  ;;  %v748_v32 = vmul.f32 0.6931472, %v1558_v29 }
 0x300   :  { %v1003_v55 = vsub.f32 %v742_v53, %v966_v28  ;;  %v1004_v5 = vsub.f32 %v744_v31, %v968_v37  ;;  %v1092_v16 = vadd.f32 %v1091_v60, %v1090_v58 }
 0x302   :  { %v1035_v4 = vsel %vm425_vm14, %v1003_v55, 0.0  ;;  %v1036_v0 = vsel %vm2847_vm4, %v1004_v5, 0.0  ;;  %v1560_v2 = vpop.eup %1559  ;;  %vm2849_vm14 = vcmp.ne.s32.totalorder %v2821_v48, 4294967196 }
 0x303   :  { %v1093_v38 = vsel %vm1041_vm12, %v1035_v4, 0.0  ;;  %v970_v42 = vpop.xlane.xlu1 %969  ;;  %v972_v9 = vpop.xlane.xlu0 %971  ;;  %v1095_v14 = vsel %vm1041_vm12, %v1036_v0, 0.0  ;;  %v750_v17 = vmul.f32 0.6931472, %v1560_v2 }
 0x304   :  { %v1094_v40 = vadd.f32 %v1093_v38, %v1092_v16  ;;  %v1005_v49 = vsub.f32 %v746_v8, %v970_v42  ;;  %v1006_v50 = vsub.f32 %v748_v32, %v972_v9 }
 0x306   :  { %v1562_v6 = vpop.eup %1561  ;;  %v1096_v39 = vadd.f32 %v1095_v14, %v1094_v40  ;;  %v1037_v7 = vsel %vm2848_vm5, %v1005_v49, 0.0  ;;  %v1038_v23 = vsel %vm2849_vm14, %v1006_v50, 0.0 }
 0x307   :  { %v1097_v10 = vsel %vm1041_vm12, %v1037_v7, 0.0  ;;  %v974_v36 = vpop.xlane.xlu1 %973  ;;  %v752_v22 = vmul.f32 0.6931472, %v1562_v6  ;;  %v976_v12 = vpop.xlane.xlu0 %975  ;;  %v1099_v41 = vsel %vm1041_vm12, %v1038_v23, 0.0 }
 0x308   :  { %v1098_v19 = vadd.f32 %v1097_v10, %v1096_v39  ;;  %v1007_v51 = vsub.f32 %v750_v17, %v974_v36 }
 0x309   :  { %v1008_v26 = vsub.f32 %v752_v22, %v976_v12 }
 0x30a   :  { %v1100_v27 = vadd.f32 %v1099_v41, %v1098_v19  ;;  %v1039_v3 = vsel %vm2850_vm7, %v1007_v51, 0.0 }
 0x30b   :  { %v1101_v43 = vsel %vm1041_vm12, %v1039_v3, 0.0  ;;  %v1040_v48 = vsel %vm2851_vm8, %v1008_v26, 0.0  ;;  %v1244_v45 = vpop.xlane.xlu0 %1243 }
 0x30c   :  { %v1102_v54 = vadd.f32 %v1101_v43, %v1100_v27  ;;  %v1103_v57 = vsel %vm1041_vm12, %v1040_v48, 0.0  ;;  %v1245_v62 = vrot.slane %v1244_v45, 4 }
 0x30e   :  { %v1104_v47 = vadd.f32 %v1103_v57, %v1102_v54  ;;  %v1246_v15 = vadd.f32 %v1245_v62, %v1244_v45 }
 0x310   :  { %1105 = vadd.xlane.f32.xlu1 %v1104_v47  ;;  %v1247_v13 = vrot.slane %v1246_v15, 2 }
 0x312   :  { %v1248_v25 = vadd.f32 %v1247_v13, %v1246_v15 }
 0x314   :  { %v1249_v46 = vrot.slane %v1248_v25, 1 }
 0x316   :  { %v1250_v34 = vadd.f32 %v1249_v46, %v1248_v25 }
 0x39d   :  { %v1106_v11 = vpop.xlane.xlu1 %1105 }
 0x39e   :  { %v1107_v18 = vrot.slane %v1106_v11, 4 }
 0x3a0   :  { %v1108_v59 = vadd.f32 %v1107_v18, %v1106_v11 }
 0x3a2   :  { %v1109_v61 = vrot.slane %v1108_v59, 2 }
 0x3a4   :  { %v1110_v21 = vadd.f32 %v1109_v61, %v1108_v59 }
 0x3a6   :  { %v1111_v52 = vrot.slane %v1110_v21, 1 }
 0x3a8   :  { %v1112_v44 = vadd.f32 %v1111_v52, %v1110_v21 }
 0x3aa   :  { %1407 = vpush %v1112_v44 }
 0x3ab   :  { %1409 = vpush %v1250_v34 }
 0x3db   :  { %s1408_s15 = spop %1407 }
 0x3dc   :  { %v1114_v20 = vstv %s1408_s15  ;;  %s1410_s1 = spop %1409 }
 0x3dd   :  { %1115 = vst [vmem:[#allocation2] sm:$0xff] %v1114_v20  ;;  %v1252_v24 = vstv %s1410_s1 }
 0x3de   :  { %1253 = vst [vmem:[#allocation4] sm:$0xff] %v1252_v24 }
 0x3df   :  { %1574 = shalt.err (!%p1571_p4)
}
 0x3e0   :  { %s1575_s18 = scalar_lea.hbm %s2675_s4, 128 }
 0x3e1   :  { %p1576_p5 = scmp.ne.s32.totalorder %s2675_s4, %s1575_s18  ;;  %p1579_p6 = scmp.lt.u32.totalorder %s1575_s18, %s2675_s4 }
 0x3e3   :  { %p1581_p7 = pnand %p1579_p6, %p1576_p5 }
 0x3e5   :  { %1584 = shalt.err (!%p1581_p7)
}
 0x3e6   :  { %1263 = dma.vmem_to_hbm [thread:$0]  %s1261_s12, 128, %s2675_s4, [#allocation3]  }
 0x3e7   :  { %s1585_s25 = scalar_lea.vmem %s2640_s14, 128  ;;  %p1590_p9 = scmp.lt.s32.totalorder %s2640_s14, %s2640_s14 }
 0x3e8   :  { %p1586_p8 = scmp.ne.s32.totalorder %s2640_s14, %s1585_s25  ;;  %p1591_p10 = scmp.lt.s32.totalorder %s1585_s25, %s1585_s25 }
 0x3ea   :  { %p1592_p11 = por %p1591_p10, %p1590_p9 }
 0x3ec   :  { %p1593_p12 = pnand %p1592_p11, %p1586_p8 }
 0x3ee   :  { %1596 = shalt.err (!%p1593_p12)
}
 0x3ef   :  { %s1597_s2 = scalar_lea.hbm %s2676_s5, 128 }
 0x3f0   :  { %p1598_p13 = scmp.ne.s32.totalorder %s2676_s5, %s1597_s2  ;;  %p1601_p0 = scmp.lt.u32.totalorder %s1597_s2, %s2676_s5 }
 0x3f2   :  { %p1603_p1 = pnand %p1601_p0, %p1598_p13 }
 0x3f4   :  { %1606 = shalt.err (!%p1603_p1)
}
 0x3f5   :  { %1273 = dma.vmem_to_hbm [thread:$0]  %s2640_s14, 128, %s2676_s5, [#allocation5]  }
 0x3f6   :  { %1607 = dma.done.wait [#allocation3], 128  }
 0x3f7   :  { %1608 = vsyncadd [#allocation3], 4294967168 }
 0x3f8   :  { %1609 = dma.done.wait [#allocation5], 128  }
 0x3f9   :  { %1610 = vsyncadd [#allocation5], 4294967168 }
 0x3fa   :  { %1280 = vsyncpa [#allocation3], 1 }
 0x3fb   :  { %1281 = vsyncpa [#allocation5], 1 }

</bundles_post_ra>
